<compile_context>
chip_gen: v5e
topology: v5e:2x2
jax: 0.10.0
libtpu: 0.0.40
codegen_flags: <defaults>
</compile_context>

<pallas_src>
import numpy as np
import jax
import jax.numpy as jnp
from jax.experimental import pallas as pl
from jax.experimental.pallas import tpu as pltpu

WINDOW_SIZE = 11
SIGMA = 1.5
C1 = 0.01 ** 2
C2 = 0.03 ** 2


def _gaussian_1d(window_size, sigma):
    x = np.arange(window_size, dtype=np.float64)
    g = np.exp(-((x - window_size // 2) ** 2) / (2.0 * sigma ** 2))
    g = g / g.sum()
    return g.astype(np.float32)


def _toeplitz_same(n, g):
    # T[i, j] = g[j - i + P]  -> "same" zero-padded cross-correlation along one axis
    K = g.shape[0]
    P = K // 2
    T = np.zeros((n, n), dtype=np.float32)
    for i in range(n):
        for j in range(max(0, i - P), min(n, i + P + 1)):
            T[i, j] = g[j - i + P]
    return T


def _ssim3d_kernel(khwt_ref, td_ref, x_ref, y_ref, out_ref):
    # One (n, c) volume per grid step, laid out lane-dense as (D, H*W).
    x = x_ref[...]                # (D, H*W) float32
    y = y_ref[...]
    khwt = khwt_ref[...]          # (H*W, H*W) = kron(Th, Tw)^T, resident across grid
    td = td_ref[...]              # (D, D), resident across grid

    def blur(v):
        # Separable "same" 3D Gaussian blur as two matmuls:
        #   (H, W) blur: right-multiply by kron(Th, Tw)^T on the lane axis
        #   D blur:      left-multiply by Td on the sublane axis
        t = jnp.dot(v, khwt, preferred_element_type=jnp.float32)
        return jnp.dot(td, t, preferred_element_type=jnp.float32)

    mu1 = blur(x)
    mu2 = blur(y)
    e_xx = blur(x * x)
    e_yy = blur(y * y)
    e_xy = blur(x * y)

    mu1_sq = mu1 * mu1
    mu2_sq = mu2 * mu2
    mu1_mu2 = mu1 * mu2
    sigma1_sq = e_xx - mu1_sq
    sigma2_sq = e_yy - mu2_sq
    sigma12 = e_xy - mu1_mu2

    num = (2.0 * mu1_mu2 + C1) * (2.0 * sigma12 + C2)
    den = (mu1_sq + mu2_sq + C1) * (sigma1_sq + sigma2_sq + C2)

    # Approx EUP reciprocal + two Newton steps -> ~f32 accuracy, keeps the
    # divide off the VALU slots.
    r = pl.reciprocal(den, approx=True)
    r = r * (2.0 - den * r)
    r = r * (2.0 - den * r)
    ssim_map = num * r

    # Lane-dense partial sum (reduce only the sublane/D axis in-kernel); the
    # final mean happens in the wrapper.
    out_ref[...] = jnp.sum(ssim_map, axis=0, keepdims=True)


def ssim3d(img1, img2, window_size=WINDOW_SIZE, size_average=True):
    """SSIM3D.forward equivalent (size_average=True path)."""
    assert img1.shape == img2.shape
    # TODO(synk): size_average=False branch (mean over dims 1,1,1) not implemented.
    assert size_average, "only the default size_average=True path is implemented"
    N, C, D, H, W = img1.shape
    HW = H * W
    nblk = N * C

    g = _gaussian_1d(window_size, SIGMA)
    td = jnp.asarray(_toeplitz_same(D, g))                       # (D, D)
    Th = _toeplitz_same(H, g)
    Tw = _toeplitz_same(W, g)
    khw_t = jnp.asarray(np.kron(Th, Tw).T)                       # (H*W, H*W)

    x = img1.astype(jnp.float32).reshape(nblk, D, HW)
    y = img2.astype(jnp.float32).reshape(nblk, D, HW)

    # Advisory cost estimate: two matmuls per blur operand (5 operands / block).
    flops = 2 * 5 * nblk * D * HW * (HW + D)
    bytes_accessed = 4 * (2 * nblk * D * HW + HW * HW + D * D + nblk * HW)
    transcendentals = nblk * D * HW

    partial = pl.pallas_call(
        _ssim3d_kernel,
        out_shape=jax.ShapeDtypeStruct((nblk, 1, HW), jnp.float32),
        grid=(nblk,),
        in_specs=[
            pl.BlockSpec((HW, HW), lambda i: (0, 0)),            # kron(Th, Tw)^T (resident)
            pl.BlockSpec((D, D), lambda i: (0, 0)),              # Td (resident)
            pl.BlockSpec((None, D, HW), lambda i: (i, 0, 0)),    # x volume i
            pl.BlockSpec((None, D, HW), lambda i: (i, 0, 0)),    # y volume i
        ],
        out_specs=pl.BlockSpec((None, 1, HW), lambda i: (i, 0, 0)),
        compiler_params=pltpu.CompilerParams(
            dimension_semantics=("parallel",)),
        cost_estimate=pl.CostEstimate(
            flops=flops,
            transcendentals=transcendentals,
            bytes_accessed=bytes_accessed),
    )(khw_t, td, x, y)

    return jnp.sum(partial) / (N * C * D * H * W)


def ssim3d_reference(img1, img2, window_size=WINDOW_SIZE):
    """Pure-JAX reference matching torch F.conv3d semantics (cross-correlation)."""
    N, C, D, H, W = img1.shape
    g = jnp.asarray(_gaussian_1d(window_size, SIGMA))
    w3 = jnp.einsum('a,b,c->abc', g, g, g)
    window = jnp.broadcast_to(w3, (C, 1, window_size, window_size, window_size))
    pad = window_size // 2

    def conv(x):
        return jax.lax.conv_general_dilated(
            x.astype(jnp.float32), window,
            window_strides=(1, 1, 1),
            padding=[(pad, pad)] * 3,
            dimension_numbers=('NCDHW', 'OIDHW', 'NCDHW'),
            feature_group_count=C)

    mu1 = conv(img1)
    mu2 = conv(img2)
    mu1_sq, mu2_sq, mu1_mu2 = mu1 * mu1, mu2 * mu2, mu1 * mu2
    sigma1_sq = conv(img1 * img1) - mu1_sq
    sigma2_sq = conv(img2 * img2) - mu2_sq
    sigma12 = conv(img1 * img2) - mu1_mu2
    ssim_map = ((2 * mu1_mu2 + C1) * (2 * sigma12 + C2)
                / ((mu1_sq + mu2_sq + C1) * (sigma1_sq + sigma2_sq + C2)))
    return jnp.mean(ssim_map)


if __name__ == "__main__":
    key = jax.random.PRNGKey(0)
    k1, k2 = jax.random.split(key)
    N, C, D, H, W = 2, 2, 16, 16, 16
    img1 = jax.random.uniform(k1, (N, C, D, H, W), dtype=jnp.float32)
    img2 = jax.random.uniform(k2, (N, C, D, H, W), dtype=jnp.float32)

    out = ssim3d(img1, img2)
    out = jax.block_until_ready(out)

    ref = ssim3d_reference(img1, img2)
    assert jnp.allclose(out, ref, rtol=1e-4, atol=1e-5), (float(out), float(ref))

    print("KERNEL_OK")
</pallas_src>

<mosaic_0001>
module attributes {stable_mosaic.version = 11 : i64} {
  func.func @_ssim3d_kernel(%arg0: i32, %arg1: memref<256x256xf32, #tpu.memory_space<vmem>>, %arg2: memref<16x16xf32, #tpu.memory_space<vmem>>, %arg3: memref<1x16x256xf32, #tpu.memory_space<vmem>>, %arg4: memref<1x16x256xf32, #tpu.memory_space<vmem>>, %arg5: memref<1x1x256xf32, #tpu.memory_space<vmem>>) attributes {dimension_semantics = [#tpu.dimension_semantics<parallel>], iteration_bounds = array<i64: 4>, scalar_prefetch = 0 : i64, scratch_operands = 0 : i64, tpu.core_type = #tpu.core_type<tc>, window_params = [{pipeline_mode = #tpu.pipeline_mode<synchronous>, transform_indices = @transform_0, window_bounds = array<i64: 256, 256>}, {pipeline_mode = #tpu.pipeline_mode<synchronous>, transform_indices = @transform_1, window_bounds = array<i64: 16, 16>}, {transform_indices = @transform_2, window_bounds = array<i64: 1, 16, 256>}, {transform_indices = @transform_3, window_bounds = array<i64: 1, 16, 256>}, {transform_indices = @transform_4, window_bounds = array<i64: 1, 1, 256>}]} {
    %c0 = arith.constant 0 : index
    %c0_0 = arith.constant 0 : index
    %c0_1 = arith.constant 0 : index
    %0 = vector.load %arg3[%c0, %c0_0, %c0_1] : memref<1x16x256xf32, #tpu.memory_space<vmem>>, vector<1x16x256xf32>
    %1 = vector.shape_cast %0 : vector<1x16x256xf32> to vector<16x256xf32>
    %c0_2 = arith.constant 0 : index
    %c0_3 = arith.constant 0 : index
    %c0_4 = arith.constant 0 : index
    %2 = vector.load %arg4[%c0_2, %c0_3, %c0_4] : memref<1x16x256xf32, #tpu.memory_space<vmem>>, vector<1x16x256xf32>
    %3 = vector.shape_cast %2 : vector<1x16x256xf32> to vector<16x256xf32>
    %c0_5 = arith.constant 0 : index
    %c0_6 = arith.constant 0 : index
    %4 = vector.load %arg1[%c0_5, %c0_6] : memref<256x256xf32, #tpu.memory_space<vmem>>, vector<256x256xf32>
    %c0_7 = arith.constant 0 : index
    %c0_8 = arith.constant 0 : index
    %5 = vector.load %arg2[%c0_7, %c0_8] : memref<16x16xf32, #tpu.memory_space<vmem>>, vector<16x16xf32>
    %cst = arith.constant dense<0.000000e+00> : vector<16x256xf32>
    %6 = tpu.matmul %1, %4, %cst {dimension_numbers = #tpu.dot_dimension_numbers<[1], [0], [0], [1], [0, 0, 1, 1], [], []>} : vector<16x256xf32>, vector<256x256xf32>, vector<16x256xf32> -> vector<16x256xf32>
    %cst_9 = arith.constant dense<0.000000e+00> : vector<16x256xf32>
    %7 = tpu.matmul %5, %6, %cst_9 {dimension_numbers = #tpu.dot_dimension_numbers<[1], [0], [0], [1], [0, 0, 1, 1], [], []>} : vector<16x16xf32>, vector<16x256xf32>, vector<16x256xf32> -> vector<16x256xf32>
    %cst_10 = arith.constant dense<0.000000e+00> : vector<16x256xf32>
    %8 = tpu.matmul %3, %4, %cst_10 {dimension_numbers = #tpu.dot_dimension_numbers<[1], [0], [0], [1], [0, 0, 1, 1], [], []>} : vector<16x256xf32>, vector<256x256xf32>, vector<16x256xf32> -> vector<16x256xf32>
    %cst_11 = arith.constant dense<0.000000e+00> : vector<16x256xf32>
    %9 = tpu.matmul %5, %8, %cst_11 {dimension_numbers = #tpu.dot_dimension_numbers<[1], [0], [0], [1], [0, 0, 1, 1], [], []>} : vector<16x16xf32>, vector<16x256xf32>, vector<16x256xf32> -> vector<16x256xf32>
    %10 = arith.mulf %1, %1 : vector<16x256xf32>
    %cst_12 = arith.constant dense<0.000000e+00> : vector<16x256xf32>
    %11 = tpu.matmul %10, %4, %cst_12 {dimension_numbers = #tpu.dot_dimension_numbers<[1], [0], [0], [1], [0, 0, 1, 1], [], []>} : vector<16x256xf32>, vector<256x256xf32>, vector<16x256xf32> -> vector<16x256xf32>
    %cst_13 = arith.constant dense<0.000000e+00> : vector<16x256xf32>
    %12 = tpu.matmul %5, %11, %cst_13 {dimension_numbers = #tpu.dot_dimension_numbers<[1], [0], [0], [1], [0, 0, 1, 1], [], []>} : vector<16x16xf32>, vector<16x256xf32>, vector<16x256xf32> -> vector<16x256xf32>
    %13 = arith.mulf %3, %3 : vector<16x256xf32>
    %cst_14 = arith.constant dense<0.000000e+00> : vector<16x256xf32>
    %14 = tpu.matmul %13, %4, %cst_14 {dimension_numbers = #tpu.dot_dimension_numbers<[1], [0], [0], [1], [0, 0, 1, 1], [], []>} : vector<16x256xf32>, vector<256x256xf32>, vector<16x256xf32> -> vector<16x256xf32>
    %cst_15 = arith.constant dense<0.000000e+00> : vector<16x256xf32>
    %15 = tpu.matmul %5, %14, %cst_15 {dimension_numbers = #tpu.dot_dimension_numbers<[1], [0], [0], [1], [0, 0, 1, 1], [], []>} : vector<16x16xf32>, vector<16x256xf32>, vector<16x256xf32> -> vector<16x256xf32>
    %16 = arith.mulf %1, %3 : vector<16x256xf32>
    %cst_16 = arith.constant dense<0.000000e+00> : vector<16x256xf32>
    %17 = tpu.matmul %16, %4, %cst_16 {dimension_numbers = #tpu.dot_dimension_numbers<[1], [0], [0], [1], [0, 0, 1, 1], [], []>} : vector<16x256xf32>, vector<256x256xf32>, vector<16x256xf32> -> vector<16x256xf32>
    %cst_17 = arith.constant dense<0.000000e+00> : vector<16x256xf32>
    %18 = tpu.matmul %5, %17, %cst_17 {dimension_numbers = #tpu.dot_dimension_numbers<[1], [0], [0], [1], [0, 0, 1, 1], [], []>} : vector<16x16xf32>, vector<16x256xf32>, vector<16x256xf32> -> vector<16x256xf32>
    %19 = arith.mulf %7, %7 : vector<16x256xf32>
    %20 = arith.mulf %9, %9 : vector<16x256xf32>
    %21 = arith.mulf %7, %9 : vector<16x256xf32>
    %22 = arith.subf %12, %19 : vector<16x256xf32>
    %23 = arith.subf %15, %20 : vector<16x256xf32>
    %24 = arith.subf %18, %21 : vector<16x256xf32>
    %cst_18 = arith.constant 2.000000e+00 : f32
    %25 = vector.broadcast %cst_18 : f32 to vector<16x256xf32>
    %26 = arith.mulf %25, %21 : vector<16x256xf32>
    %cst_19 = arith.constant 9.99999974E-5 : f32
    %27 = vector.broadcast %cst_19 : f32 to vector<16x256xf32>
    %28 = arith.addf %26, %27 : vector<16x256xf32>
    %cst_20 = arith.constant 2.000000e+00 : f32
    %29 = vector.broadcast %cst_20 : f32 to vector<16x256xf32>
    %30 = arith.mulf %29, %24 : vector<16x256xf32>
    %cst_21 = arith.constant 8.99999984E-4 : f32
    %31 = vector.broadcast %cst_21 : f32 to vector<16x256xf32>
    %32 = arith.addf %30, %31 : vector<16x256xf32>
    %33 = arith.mulf %28, %32 : vector<16x256xf32>
    %34 = arith.addf %19, %20 : vector<16x256xf32>
    %cst_22 = arith.constant 9.99999974E-5 : f32
    %35 = vector.broadcast %cst_22 : f32 to vector<16x256xf32>
    %36 = arith.addf %34, %35 : vector<16x256xf32>
    %37 = arith.addf %22, %23 : vector<16x256xf32>
    %cst_23 = arith.constant 8.99999984E-4 : f32
    %38 = vector.broadcast %cst_23 : f32 to vector<16x256xf32>
    %39 = arith.addf %37, %38 : vector<16x256xf32>
    %40 = arith.mulf %36, %39 : vector<16x256xf32>
    %41 = tpu.reciprocal %40 {approx = true} : vector<16x256xf32> -> vector<16x256xf32>
    %42 = arith.mulf %40, %41 : vector<16x256xf32>
    %cst_24 = arith.constant 2.000000e+00 : f32
    %43 = vector.broadcast %cst_24 : f32 to vector<16x256xf32>
    %44 = arith.subf %43, %42 : vector<16x256xf32>
    %45 = arith.mulf %41, %44 : vector<16x256xf32>
    %46 = arith.mulf %40, %45 : vector<16x256xf32>
    %cst_25 = arith.constant 2.000000e+00 : f32
    %47 = vector.broadcast %cst_25 : f32 to vector<16x256xf32>
    %48 = arith.subf %47, %46 : vector<16x256xf32>
    %49 = arith.mulf %45, %48 : vector<16x256xf32>
    %50 = arith.mulf %33, %49 : vector<16x256xf32>
    %cst_26 = arith.constant dense<0.000000e+00> : vector<256xf32>
    %51 = vector.multi_reduction <add>, %50, %cst_26 [0] : vector<16x256xf32> to vector<256xf32>
    %52 = vector.shape_cast %51 : vector<256xf32> to vector<1x256xf32>
    %c0_27 = arith.constant 0 : index
    %c0_28 = arith.constant 0 : index
    %c0_29 = arith.constant 0 : index
    %53 = vector.load %arg5[%c0_27, %c0_28, %c0_29] : memref<1x1x256xf32, #tpu.memory_space<vmem>>, vector<1x1x256xf32>
    %54 = vector.shape_cast %53 : vector<1x1x256xf32> to vector<1x256xf32>
    %55 = vector.shape_cast %52 : vector<1x256xf32> to vector<1x1x256xf32>
    tpu.vector_store %arg5[%c0_27, %c0_28, %c0_29], %55 {strides = array<i32>} : memref<1x1x256xf32, #tpu.memory_space<vmem>>, vector<1x1x256xf32>,
    return
  }
  func.func @transform_0(%arg0: i32) -> (i32, i32) {
    %c0_i32 = arith.constant 0 : i32
    %c0_i32_0 = arith.constant 0 : i32
    %c0_i32_1 = arith.constant 0 : i32
    return %c0_i32, %c0_i32_0 : i32, i32
  }
  func.func @transform_1(%arg0: i32) -> (i32, i32) {
    %c0_i32 = arith.constant 0 : i32
    %c0_i32_0 = arith.constant 0 : i32
    %c0_i32_1 = arith.constant 0 : i32
    return %c0_i32, %c0_i32_0 : i32, i32
  }
  func.func @transform_2(%arg0: i32) -> (i32, i32, i32) {
    %c0_i32 = arith.constant 0 : i32
    %c0_i32_0 = arith.constant 0 : i32
    %c0_i32_1 = arith.constant 0 : i32
    return %arg0, %c0_i32, %c0_i32_0 : i32, i32, i32
  }
  func.func @transform_3(%arg0: i32) -> (i32, i32, i32) {
    %c0_i32 = arith.constant 0 : i32
    %c0_i32_0 = arith.constant 0 : i32
    %c0_i32_1 = arith.constant 0 : i32
    return %arg0, %c0_i32, %c0_i32_0 : i32, i32, i32
  }
  func.func @transform_4(%arg0: i32) -> (i32, i32, i32) {
    %c0_i32 = arith.constant 0 : i32
    %c0_i32_0 = arith.constant 0 : i32
    %c0_i32_1 = arith.constant 0 : i32
    return %arg0, %c0_i32, %c0_i32_0 : i32, i32, i32
  }
}

</mosaic_0001>

<bundles_post_ra>
// kernel: tpu_custom_call.1
= control target key start
LH: loop header
LB: loop body
LE: loop exit
PB: predicated region body
PF: predicated region fallthrough
CT: control target
= control target key end

     0   :  { %s2509_s0 = inlined_call_operand.hbm [shape: f32[256,256], index: 0, kind: input, shape index: {}]   ;;  %s2510_s1 = inlined_call_operand.hbm [shape: f32[16,16], index: 1, kind: input, shape index: {}]   ;;  %s2511_s2 = inlined_call_operand.hbm [shape: f32[4,16,256], index: 2, kind: input, shape index: {}]   ;;  %s2512_s3 = inlined_call_operand.hbm [shape: f32[4,16,256], index: 3, kind: input, shape index: {}]   ;;  %s2513_s4 = inlined_call_operand.hbm [shape: f32[4,1,256], index: 4, kind: output, shape index: {}]  }
   0x1   :  { %2599 = sst [smem:[#allocation54_spill]] %s2509_s0 }
   0x2   :  { %2600 = sst [smem:[#allocation55_spill]] %s2510_s1 }
   0x3   :  { %2601 = sst [smem:[#allocation56_spill]] %s2511_s2 }
   0x4   :  { %9 = vsyncpa [#allocation3], 0 }
   0x5   :  { %10 = vsyncpa [#allocation6], 0 }
   0x6   :  { %11 = vsyncpa [#allocation4], 0 }
   0x7   :  { %13 = vsyncpa [#allocation4 + $0x1], 0  ;;  %s1678_s15 = smov 0   ;;  %s1680_s16 = smov 0  }
   0x8   :  { %s1682_s17 = smov 0   ;;  %s1684_s18 = smov 0  }
   0x9 LB: > { %2602 = sst [smem:[#allocation14_spill]] %s1641_s17  ;;  %s1699_s19 = sadd.s32 4294967295, %s1645_s18   ;;  %s1645_s18 = sphi %s1684_s18, %s2722_s18   ;;  %s1641_s17 = sphi %s1682_s17, %s2724_s17   ;;  %s1637_s16 = sphi %s1680_s16, %s2726_s16   ;;  %s1633_s15 = sphi %s1678_s15, %s2725_s15  }
   0xa   : > { %s1317_s20 = sadd.s32 4294967294, %s1645_s18   ;;  %p81_p0 = scmp.ne.s32.totalorder %s1637_s16, %s1633_s15 }
   0xb   : > { %p2519_p1 = scmp.eq.s32.totalorder %s1699_s19, 0  ;;  %p131_p2 = scmp.eq.s32.totalorder %s1699_s19, 3 }
   0xc   : > { %p137_p3 = scmp.eq.s32.totalorder %s1317_s20, 3  ;;  %p1318_p5 = scmp.ge.s32.totalorder %s1645_s18, 1 }
   0xd   : > { %p1708_p4 = por %p2519_p1, %p81_p0  ;;  %p144_p7 = scmp.lt.s32.totalorder %s1645_s18, 5 }
   0xe   : > { %p1713_p6 = por %p137_p3, %p81_p0  ;;  %s2605_s0 = sld [smem:[#allocation54_spill]] }
   0xf   : > { %p1721_p8 = pnand %p1318_p5, %p144_p7  ;;  %s1647_s27 = smov [#allocation2]  }
  0x10   : > { %s157_s28 = sshll.u32 %s1647_s27, 4  ;;  %s1734_s30 = sadd.s32 1, %s1645_s18   ;;  %s158_s28 = int_to_ptr.vmem [resolvable:$true] %s157_s28 }
  0x11   : > { %p1378_p9 = pneg %p1721_p8  ;;  %2608 = sst [smem:[#allocation15_spill]] %s1734_s30 }
  0x12   : > { %s2514_s5 = smov 256   ;;  %s2516_s6 = smov 16  }
  0x13   : > { %p1729_p10 = pnand %p1378_p9, %p2519_p1  ;;  %s65_s7 = ssub.s32 %s1645_s18, %s1734_s30 }
  0x14   : > { %s155_s25 = sshll.u32 %s2605_s0, 4  ;;  %s68_s8 = sadd.s32 1, %s1641_s17  ;;  %s156_s25 = int_to_ptr.hbm [resolvable:$true] %s155_s25 }
  0x15   : > { %1381 = dma.hbm_to_vmem [thread:$0]  (!%p1729_p10), %s156_s25, 8192, %s158_s28, [#allocation3], %s2514_s5, %s2514_s5, %s2516_s6  }
  0x16   : > { %p66_p11 = scmp.eq.s32.totalorder %s65_s7, 0  ;;  %p75_p12 = scmp.ne.s32.totalorder %s1641_s17, %s1637_s16 }
  0x17   : > { %p76_p13 = scmp.eq.s32.totalorder %s1645_s18, 0  ;;  %p1398_p0 = scmp.lt.s32.totalorder %s1645_s18, 4 }
  0x18   : > { %s1749_s9 = scalar_select %p66_p11, %s1641_s17, %s68_s8  }
  0x19   : > { %p77_p3 = por %p76_p13, %p75_p12  ;;  %p1753_p5 = por %p131_p2, %p75_p12 }
  0x1a   : > { %2609 = sst [smem:[#allocation16_spill]] %s1749_s9  ;;  %s185_s11 = sand.u32 1, %s1645_s18  }
  0x1b   : > { %s187_s12 = sand.u32 1, %s1641_s17   ;;  %s2518_s14 = sshll.u32 %s1645_s18, 5 }
  0x1c   : > { %s1759_s13 = sshll.u32 %s187_s12, 5  ;;  %s2611_s2 = sld [smem:[#allocation56_spill]] }
  0x1d   : > { %s189_s25 = scalar_lea.vmem [#allocation7], %s1759_s13  ;;  %p1770_p2 = pnand %p1398_p0, %p77_p3 }
  0x1e   : > { %s197_s27 = sshll.u32 %s189_s25, 4  ;;  %s2613_s1 = sld [smem:[#allocation55_spill]]  ;;  %s198_s27 = int_to_ptr.vmem [resolvable:$true] %s197_s27 }
  0x1f   : > { %s1777_s6 = scalar_lea.sflag [#allocation3], %s185_s11  ;;  %p1485_p9 = pneg %p1770_p2 }
  0x22   : > { %s194_s24 = scalar_lea.hbm %s2611_s2, %s2518_s14  ;;  %s1488_s8 = scalar_lea.hbm %s2611_s2, 128 }
  0x23   : > { %s195_s28 = sshll.u32 %s194_s24, 4  ;;  %s196_s28 = int_to_ptr.hbm [resolvable:$true] %s195_s28 }
  0x24   : > { %s169_s5 = sshll.u32 %s2613_s1, 4  ;;  %s1481_s20 = sshra.s32 %s196_s28, 4  ;;  %s170_s5 = int_to_ptr.hbm [resolvable:$true] %s169_s5  ;;  %s1482_s20 = int_to_ptr.hbm [resolvable:$true] %s1481_s20 }
  0x25   : > { %s1483_s23 = scalar_lea.hbm %s1482_s20, 32  ;;  %p1489_p13 = scmp.lt.s32.totalorder %s1482_s20, %s2611_s2 }
  0x26   : > { %p1484_p7 = scmp.ne.s32.totalorder %s1482_s20, %s1483_s23  ;;  %p1490_p0 = scmp.lt.s32.totalorder %s1488_s8, %s1483_s23 }
  0x28   : > { %p1486_p11 = pnand %p1485_p9, %p1484_p7  ;;  %p1491_p3 = por %p1490_p0, %p1489_p13 }
  0x2a   : > { %p1487_p12 = pneg %p1486_p11 }
  0x2c   : > { %p1492_p1 = pnand %p1491_p3, %p1487_p12 }
  0x2e   : > { %1495 = shalt.err (!%p1492_p1)
}
  0x2f   : > { %s2614_s11 = smov 16   ;;  %s2615_s0 = smov 256  }
  0x30   : > { %1388 = dma.hbm_to_vmem [thread:$0]  (!%p1770_p2), %s196_s28, 512, %s198_s27, %s1777_s6, %s2615_s0, %s2615_s0, %s2614_s11  }
  0x31   : > { %s1650_s24 = smov [#allocation5]   ;;  %s1651_s14 = smov 128  }
  0x32   : > { %s171_s25 = sshll.u32 %s1650_s24, 4  ;;  %s1652_s20 = smov 8   ;;  %s172_s25 = int_to_ptr.vmem [resolvable:$true] %s171_s25 }
  0x33   : > { %1384 = dma.hbm_to_vmem [thread:$0]  (!%p1729_p10), %s170_s5, 256, %s172_s25, [#allocation6], %s1651_s14, %s1651_s14, %s1652_s20  }
  0x34   : > { %s2616_s23 = sshll.u32 %s1645_s18, 5  ;;  %s211_s9 = scalar_lea.vmem [#allocation8], %s1759_s13 }
  0x35   : > { %s216_s1 = scalar_lea.hbm %s2512_s3, %s2616_s23  ;;  %s219_s17 = sshll.u32 %s211_s9, 4  ;;  %s220_s17 = int_to_ptr.vmem [resolvable:$true] %s219_s17 }
  0x36   : > { %s217_s2 = sshll.u32 %s216_s1, 4  ;;  %s1548_s28 = scalar_lea.hbm %s2512_s3, 128  ;;  %s218_s2 = int_to_ptr.hbm [resolvable:$true] %s217_s2 }
  0x37   : > { %s1541_s30 = sshra.s32 %s218_s2, 4  ;;  %s1542_s30 = int_to_ptr.hbm [resolvable:$true] %s1541_s30 }
  0x38   : > { %s1543_s27 = scalar_lea.hbm %s1542_s30, 32  ;;  %p1549_p10 = scmp.lt.s32.totalorder %s1542_s30, %s2512_s3 }
  0x39   : > { %p1544_p1 = scmp.ne.s32.totalorder %s1542_s30, %s1543_s27  ;;  %p1550_p12 = scmp.lt.s32.totalorder %s1548_s28, %s1543_s27 }
  0x3b   : > { %p1546_p7 = pnand %p1544_p1, %p1485_p9  ;;  %p1551_p13 = por %p1550_p12, %p1549_p10 }
  0x3d   : > { %p1547_p11 = pneg %p1546_p7 }
  0x3f   : > { %p1552_p0 = pnand %p1551_p13, %p1547_p11 }
  0x41   : > { %1555 = shalt.err (!%p1552_p0)
}
  0x42   : > { %1391 = dma.hbm_to_vmem [thread:$0]  (!%p1770_p2), %s218_s2, 512, %s220_s17, %s1777_s6, %s2615_s0, %s2615_s0, %s2614_s11  }
  0x43   : > { %231 = sbr.rel (%p1721_p8) target bundleno = 1121 (0x461), region = 36 }
  0x48   : > { %p2617_p9 = scmp.eq.s32.totalorder %s1699_s19, 0 }
  0x4a   : > { %1616 = dma.done.wait (%p2617_p9), [#allocation3], 8192   ;;  %p2618_p3 = pmov %p2617_p9 }
  0x4c   : > { %1618 = vsyncadd (%p2618_p3), [#allocation3], 4294959104  ;;  %p2619_p1 = pmov %p2618_p3 }
  0x4e   : > { %1620 = dma.done.wait (%p2619_p1), [#allocation6], 256   ;;  %p2620_p7 = pmov %p2619_p1 }
  0x4f   : > { %s243_s1 = sand.u32 1, %s1699_s19   ;;  %s1831_s0 = sand.u32 1, %s1637_s16  }
  0x50   : > { %1622 = vsyncadd (%p2620_p7), [#allocation6], 4294967040  ;;  %s1331_s2 = sshll.u32 %s1831_s0, 5  ;;  %s244_s17 = scalar_lea.sflag [#allocation3], %s243_s1 }
  0x51   : > { %s1836_s26 = scalar_lea.vmem [#allocation7], %s1331_s2 }
  0x52   : > { %1624 = dma.done.wait (%p1708_p4), %s244_s17, 1024  }
  0x53   : > { %1626 = vsyncadd (%p1708_p4), %s244_s17, 4294966272  ;;  %v1842_v0 = vld [vmem:[#allocation2 + $0xf0] sm:$0xff]  ;;  %v1846_v2 = vld [vmem:[#allocation2 + $0xf8] sm:$0xff]  ;;  %s257_s21 = scalar_lea.vmem [#allocation8], %s1331_s2  ;;  %vm454_vm0 = vcmask 130048   ;;  %s1333_s30 = sshll.u32 %s1831_s0, 1 }
  0x54   : > { %v1844_v1 = vld [vmem:[#allocation2 + $0x1f0] sm:$0xff]  ;;  %362 = vmatpush.msra.mxu0 %v1842_v0  ;;  %v1850_v3 = vld [vmem:[#allocation2 + $0x1f8] sm:$0xff]  ;;  %v1852_v4 = vld [vmem:[#allocation2 + $0xe0] sm:$0xff]  ;;  %408 = vmatpush.msra.mxu2 %v1846_v2  ;;  %s1355_s6 = sshll.u32 %s1699_s19, 1  ;;  %s287_s11 = scalar_lea.vmem [#allocation9], %s1333_s30  ;;  %vm1184_vm1 = vcmask 1040384  }
  0x55   : > { %385 = vmatpush.msra.mxu1 %v1844_v1  ;;  %v1854_v5 = vld [vmem:[#allocation2 + $0x1e0] sm:$0xff]  ;;  %431 = vmatpush.msra.mxu3 %v1850_v3  ;;  %v1858_v6 = vld [vmem:[#allocation2 + $0xe8] sm:$0xff]  ;;  %v1862_v8 = vld [vmem:[#allocation2 + $0xd0] sm:$0xff]  ;;  %s1203_s7 = scalar_lea.hbm %s2513_s4, %s1355_s6  ;;  %s1205_s14 = sshll.u32 %s287_s11, 4  ;;  %s1206_s14 = int_to_ptr.vmem [resolvable:$true] %s1205_s14 }
  0x56   : > { %v1860_v7 = vld [vmem:[#allocation2 + $0x1e8] sm:$0xff]  ;;  %363 = vmatpush.msra.mxu0 %v1852_v4  ;;  %v1866_v9 = vld [vmem:[#allocation2 + $0x1d0] sm:$0xff]  ;;  %v1868_v10 = vld [vmem:[#allocation2 + $0xd8] sm:$0xff]  ;;  %409 = vmatpush.msra.mxu2 %v1858_v6  ;;  %s1207_s20 = sshll.u32 %s1203_s7, 4  ;;  %s1193_s19 = scalar_lea.sflag [#allocation4], %s1831_s0  ;;  %s1208_s20 = int_to_ptr.hbm [resolvable:$true] %s1207_s20 }
  0x57   : > { %386 = vmatpush.msra.mxu1 %v1854_v5  ;;  %v1870_v11 = vld [vmem:[#allocation2 + $0x1d8] sm:$0xff]  ;;  %432 = vmatpush.msra.mxu3 %v1860_v7  ;;  %v1874_v12 = vld [vmem:[#allocation2 + $0xc0] sm:$0xff]  ;;  %v1880_v14 = vld [vmem:[#allocation2 + $0xc8] sm:$0xff]  ;;  %s1585_s23 = sshra.s32 %s1208_s20, 4  ;;  %s1591_s29 = scalar_lea.hbm %s2513_s4, 8  ;;  %s1586_s23 = int_to_ptr.hbm [resolvable:$true] %s1585_s23 }
  0x58   : > { %v1876_v13 = vld [vmem:[#allocation2 + $0x1c0] sm:$0xff]  ;;  %364 = vmatpush.msra.mxu0 %v1862_v8  ;;  %v1882_v15 = vld [vmem:[#allocation2 + $0x1c8] sm:$0xff]  ;;  %410 = vmatpush.msra.mxu2 %v1868_v10  ;;  %v1886_v16 = vld [vmem:[#allocation2 + $0xb0] sm:$0xff]  ;;  %s1587_s8 = scalar_lea.hbm %s1586_s23, 2  ;;  %p1592_p11 = scmp.lt.s32.totalorder %s1586_s23, %s2513_s4 }
  0x59   : > { %387 = vmatpush.msra.mxu1 %v1866_v9  ;;  %433 = vmatpush.msra.mxu3 %v1870_v11  ;;  %v1888_v17 = vld [vmem:[#allocation2 + $0x1b0] sm:$0xff]  ;;  %v1892_v18 = vld [vmem:[#allocation2 + $0xb8] sm:$0xff]  ;;  %v1898_v20 = vld [vmem:[#allocation2 + $0xa0] sm:$0xff]  ;;  %p1588_p4 = scmp.ne.s32.totalorder %s1586_s23, %s1587_s8  ;;  %p1593_p10 = scmp.lt.s32.totalorder %s1591_s29, %s1587_s8 }
  0x5a   : > { %365 = vmatpush.msra.mxu0 %v1874_v12  ;;  %v1894_v19 = vld [vmem:[#allocation2 + $0x1b8] sm:$0xff]  ;;  %411 = vmatpush.msra.mxu2 %v1880_v14  ;;  %v1900_v21 = vld [vmem:[#allocation2 + $0x1a0] sm:$0xff]  ;;  %v1904_v22 = vld [vmem:[#allocation2 + $0xa8] sm:$0xff] }
  0x5b   : > { %388 = vmatpush.msra.mxu1 %v1876_v13  ;;  %434 = vmatpush.msra.mxu3 %v1882_v15  ;;  %v1906_v23 = vld [vmem:[#allocation2 + $0x1a8] sm:$0xff]  ;;  %v1910_v24 = vld [vmem:[#allocation2 + $0x90] sm:$0xff]  ;;  %v1916_v26 = vld [vmem:[#allocation2 + $0x98] sm:$0xff]  ;;  %p1589_p8 = pnand %p1588_p4, %p1753_p5  ;;  %p1594_p12 = por %p1593_p10, %p1592_p11 }
  0x5c   : > { %366 = vmatpush.msra.mxu0 %v1886_v16  ;;  %412 = vmatpush.msra.mxu2 %v1892_v18  ;;  %2621 = vst [vmem:[#allocation17_spill] sm:$0xff] %v1910_v24  ;;  %v1912_v25 = vld [vmem:[#allocation2 + $0x190] sm:$0xff]  ;;  %v1918_v27 = vld [vmem:[#allocation2 + $0x198] sm:$0xff]  ;;  %v1922_v28 = vld [vmem:[#allocation2 + $0x80] sm:$0xff] }
  0x5d   : > { %389 = vmatpush.msra.mxu1 %v1888_v17  ;;  %435 = vmatpush.msra.mxu3 %v1894_v19  ;;  %2622 = vst [vmem:[#allocation18_spill] sm:$0xff] %v1922_v28  ;;  %v1924_v29 = vld [vmem:[#allocation2 + $0x180] sm:$0xff]  ;;  %v1928_v30 = vld [vmem:[#allocation2 + $0x88] sm:$0xff]  ;;  %v1934_v32 = vld [vmem:[#allocation2 + $0x70] sm:$0xff]  ;;  %p1590_p2 = pneg %p1589_p8 }
  0x5e   : > { %367 = vmatpush.msra.mxu0 %v1898_v20  ;;  %413 = vmatpush.msra.mxu2 %v1904_v22  ;;  %2623 = vst [vmem:[#allocation19_spill] sm:$0xff] %v1928_v30  ;;  %v1930_v31 = vld [vmem:[#allocation2 + $0x188] sm:$0xff]  ;;  %v1936_v33 = vld [vmem:[#allocation2 + $0x170] sm:$0xff]  ;;  %v1940_v34 = vld [vmem:[#allocation2 + $0x78] sm:$0xff] }
  0x5f   : > { %390 = vmatpush.msra.mxu1 %v1900_v21  ;;  %436 = vmatpush.msra.mxu3 %v1906_v23  ;;  %2624 = vst [vmem:[#allocation20_spill] sm:$0xff] %v1934_v32  ;;  %v1942_v35 = vld [vmem:[#allocation2 + $0x178] sm:$0xff]  ;;  %v1946_v36 = vld [vmem:[#allocation2 + $0x60] sm:$0xff]  ;;  %v1952_v38 = vld [vmem:[#allocation2 + $0x68] sm:$0xff]  ;;  %p1595_p13 = pnand %p1594_p12, %p1590_p2 }
  0x60   : > { %368 = vmatpush.msra.mxu0 %v1910_v24  ;;  %414 = vmatpush.msra.mxu2 %v1916_v26  ;;  %2625 = vst [vmem:[#allocation21_spill] sm:$0xff] %v1936_v33  ;;  %v1948_v37 = vld [vmem:[#allocation2 + $0x160] sm:$0xff]  ;;  %v1954_v39 = vld [vmem:[#allocation2 + $0x168] sm:$0xff]  ;;  %v1958_v40 = vld [vmem:[#allocation2 + $0x50] sm:$0xff] }
  0x61   : > { %391 = vmatpush.msra.mxu1 %v1912_v25  ;;  %437 = vmatpush.msra.mxu3 %v1918_v27  ;;  %2626 = vst [vmem:[#allocation22_spill] sm:$0xff] %v1940_v34  ;;  %v1960_v41 = vld [vmem:[#allocation2 + $0x150] sm:$0xff]  ;;  %v1964_v42 = vld [vmem:[#allocation2 + $0x58] sm:$0xff]  ;;  %v1970_v44 = vld [vmem:[#allocation2 + $0x40] sm:$0xff] }
  0x62   : > { %369 = vmatpush.msra.mxu0 %v1922_v28  ;;  %415 = vmatpush.msra.mxu2 %v1928_v30  ;;  %2627 = vst [vmem:[#allocation23_spill] sm:$0xff] %v1946_v36  ;;  %v1966_v43 = vld [vmem:[#allocation2 + $0x158] sm:$0xff]  ;;  %v1972_v45 = vld [vmem:[#allocation2 + $0x140] sm:$0xff]  ;;  %v1976_v46 = vld [vmem:[#allocation2 + $0x48] sm:$0xff] }
  0x63   : > { %392 = vmatpush.msra.mxu1 %v1924_v29  ;;  %438 = vmatpush.msra.mxu3 %v1930_v31  ;;  %2628 = vst [vmem:[#allocation24_spill] sm:$0xff] %v1948_v37  ;;  %v1978_v47 = vld [vmem:[#allocation2 + $0x148] sm:$0xff]  ;;  %v1982_v48 = vld [vmem:[#allocation2 + $0x30] sm:$0xff]  ;;  %v1988_v50 = vld [vmem:[#allocation2 + $0x38] sm:$0xff] }
  0x64   : > { %370 = vmatpush.msra.mxu0 %v1934_v32  ;;  %2629 = vst [vmem:[#allocation25_spill] sm:$0xff] %v1952_v38  ;;  %416 = vmatpush.msra.mxu2 %v1940_v34  ;;  %v1984_v49 = vld [vmem:[#allocation2 + $0x130] sm:$0xff]  ;;  %v1990_v51 = vld [vmem:[#allocation2 + $0x138] sm:$0xff]  ;;  %v1994_v52 = vld [vmem:[#allocation2 + $0x20] sm:$0xff] }
  0x65   : > { %393 = vmatpush.msra.mxu1 %v1936_v33  ;;  %439 = vmatpush.msra.mxu3 %v1942_v35  ;;  %2630 = vst [vmem:[#allocation26_spill] sm:$0xff] %v1958_v40  ;;  %v1996_v53 = vld [vmem:[#allocation2 + $0x120] sm:$0xff]  ;;  %v2000_v54 = vld [vmem:[#allocation2 + $0x28] sm:$0xff]  ;;  %v2006_v56 = vld [vmem:[#allocation2 + $0x10] sm:$0xff] }
  0x66   : > { %2631 = vst [vmem:[#allocation27_spill] sm:$0xff] %v1960_v41  ;;  %371 = vmatpush.msra.mxu0 %v1946_v36  ;;  %417 = vmatpush.msra.mxu2 %v1952_v38  ;;  %v2002_v55 = vld [vmem:[#allocation2 + $0x128] sm:$0xff]  ;;  %v2008_v57 = vld [vmem:[#allocation2 + $0x110] sm:$0xff]  ;;  %v2012_v58 = vld [vmem:[#allocation2 + $0x18] sm:$0xff] }
  0x67   : > { %394 = vmatpush.msra.mxu1 %v1948_v37  ;;  %2632 = vst [vmem:[#allocation28_spill] sm:$0xff] %v1964_v42  ;;  %440 = vmatpush.msra.mxu3 %v1954_v39  ;;  %v2014_v59 = vld [vmem:[#allocation2 + $0x118] sm:$0xff]  ;;  %v2018_v60 = vld [vmem:[#allocation2] sm:$0xff]  ;;  %v2024_v62 = vld [vmem:[#allocation2 + $0x8] sm:$0xff] }
  0x68   : > { %2633 = vst [vmem:[#allocation29_spill] sm:$0xff] %v1970_v44  ;;  %372 = vmatpush.msra.mxu0 %v1958_v40  ;;  %418 = vmatpush.msra.mxu2 %v1964_v42  ;;  %v2020_v61 = vld [vmem:[#allocation2 + $0x100] sm:$0xff]  ;;  %v2026_v63 = vld [vmem:[#allocation2 + $0x108] sm:$0xff] }
  0x69   : > { %2634 = vst [vmem:[#allocation30_spill] sm:$0xff] %v1972_v45  ;;  %395 = vmatpush.msra.mxu1 %v1960_v41  ;;  %441 = vmatpush.msra.mxu3 %v1966_v43 }
  0x6a   : > { %2635 = vst [vmem:[#allocation31_spill] sm:$0xff] %v1982_v48  ;;  %373 = vmatpush.msra.mxu0 %v1970_v44  ;;  %419 = vmatpush.msra.mxu2 %v1976_v46 }
  0x6b   : > { %2636 = vst [vmem:[#allocation32_spill] sm:$0xff] %v1984_v49  ;;  %396 = vmatpush.msra.mxu1 %v1972_v45  ;;  %442 = vmatpush.msra.mxu3 %v1978_v47 }
  0x6c   : > { %2637 = vst [vmem:[#allocation33_spill] sm:$0xff] %v1988_v50  ;;  %374 = vmatpush.msra.mxu0 %v1982_v48  ;;  %420 = vmatpush.msra.mxu2 %v1988_v50 }
  0x6d   : > { %2638 = vst [vmem:[#allocation34_spill] sm:$0xff] %v1990_v51  ;;  %397 = vmatpush.msra.mxu1 %v1984_v49  ;;  %443 = vmatpush.msra.mxu3 %v1990_v51  ;;  %v2031_v51 = vld [vmem:[%s1836_s26] sm:$0xff] }
  0x6e   : > { %2639 = vst [vmem:[#allocation35_spill] sm:$0xff] %v1994_v52  ;;  %375 = vmatpush.msra.mxu0 %v1994_v52  ;;  %421 = vmatpush.msra.mxu2 %v2000_v54 }
  0x6f   : > { %2640 = vst [vmem:[#allocation36_spill] sm:$0xff] %v1996_v53  ;;  %398 = vmatpush.msra.mxu1 %v1996_v53  ;;  %444 = vmatpush.msra.mxu3 %v2002_v55 }
  0x70   : > { %2641 = vst [vmem:[#allocation37_spill] sm:$0xff] %v2000_v54  ;;  %376 = vmatpush.msra.mxu0 %v2006_v56  ;;  %422 = vmatpush.msra.mxu2 %v2012_v58 }
  0x71   : > { %2642 = vst [vmem:[#allocation38_spill] sm:$0xff] %v2002_v55  ;;  %399 = vmatpush.msra.mxu1 %v2008_v57  ;;  %445 = vmatpush.msra.mxu3 %v2014_v59  ;;  %v2034_v55 = vld [vmem:[%s1836_s26 + $0x8] sm:$0xff] }
  0x72   : > { %2643 = vst [vmem:[#allocation39_spill] sm:$0xff] %v2006_v56  ;;  %377 = vmatpush.msra.mxu0 %v2018_v60  ;;  %423 = vmatpush.msra.mxu2 %v2024_v62 }
  0x73   : > { %2644 = vst [vmem:[#allocation40_spill] sm:$0xff] %v2008_v57  ;;  %400 = vmatpush.msra.mxu1 %v2020_v61  ;;  %446 = vmatpush.msra.mxu3 %v2026_v63 }
  0x74   : > { %2645 = vst [vmem:[#allocation41_spill] sm:$0xff] %v2012_v58  ;;  %378 = vmatmul.f32.vlgmr.msra.gmra.mxu0 %v2031_v51  ;;  %401 = vmatmul.f32.vlgmr.msra.gmra.mxu1 %v2034_v55 }
  0x75   : > { %2646 = vst [vmem:[#allocation42_spill] sm:$0xff] %v2014_v59  ;;  %424 = vmatmul.f32.vlgmr.msra.gmra.mxu2 %v2031_v51  ;;  %447 = vmatmul.f32.vlgmr.msra.gmra.mxu3 %v2034_v55  ;;  %v2054_v59 = vld [vmem:[%s1836_s26 + $0x18] sm:$0xff] }
  0x76   : > { %2647 = vst [vmem:[#allocation43_spill] sm:$0xff] %v2018_v60  ;;  %507 = vmatpush.msrb.mxu2 %v1842_v0  ;;  %530 = vmatpush.msrb.mxu3 %v1844_v1 }
  0x77   : > { %2648 = vst [vmem:[#allocation44_spill] sm:$0xff] %v2020_v61 }
  0x78   : > { %2649 = vst [vmem:[#allocation45_spill] sm:$0xff] %v2024_v62  ;;  %508 = vmatpush.msrb.mxu2 %v1852_v4  ;;  %531 = vmatpush.msrb.mxu3 %v1854_v5 }
  0x79   : > { %2650 = vst [vmem:[#allocation46_spill] sm:$0xff] %v2026_v63  ;;  %v2051_v63 = vld [vmem:[%s1836_s26 + $0x10] sm:$0xff] }
  0x7a   : > { %2651 = vst [vmem:[#allocation47_spill] sm:$0xff] %v2031_v51  ;;  %509 = vmatpush.msrb.mxu2 %v1862_v8  ;;  %532 = vmatpush.msrb.mxu3 %v1866_v9 }
  0x7b   : > { %2652 = vst [vmem:[#allocation48_spill] sm:$0xff] %v2034_v55  ;;  %v2094_v55 = vld [vmem:[%s257_s21 + $0x10] sm:$0xff] }
  0x7c   : > { %2653 = vst [vmem:[#allocation49_spill] sm:$0xff] %v2051_v63  ;;  %510 = vmatpush.msrb.mxu2 %v1874_v12  ;;  %533 = vmatpush.msrb.mxu3 %v1876_v13 }
  0x7d   : > { %2654 = vst [vmem:[#allocation50_spill] sm:$0xff] %v2054_v59  ;;  %381 = vmatmul.f32.gmra.mxu0 %v2051_v63  ;;  %404 = vmatmul.f32.gmra.mxu1 %v2054_v59 }
  0x7e   : > { %427 = vmatmul.f32.gmra.mxu2 %v2051_v63  ;;  %450 = vmatmul.f32.gmra.mxu3 %v2054_v59  ;;  %v2086_v59 = vld [vmem:[%s257_s21] sm:$0xff]  ;;  %v2088_v63 = vld [vmem:[%s257_s21 + $0x8] sm:$0xff] }
  0x7f   : > { %511 = vmatpush.msrb.mxu2 %v1886_v16  ;;  %534 = vmatpush.msrb.mxu3 %v1888_v17  ;;  %2655 = vst [vmem:[#allocation51_spill] sm:$0xff] %v2088_v63 }
  0x81   : > { %512 = vmatpush.msrb.mxu2 %v1898_v20  ;;  %535 = vmatpush.msrb.mxu3 %v1900_v21 }
  0x83   : > { %513 = vmatpush.msrb.mxu2 %v1910_v24  ;;  %536 = vmatpush.msrb.mxu3 %v1912_v25 }
  0x85   : > { %514 = vmatpush.msrb.mxu2 %v1922_v28  ;;  %537 = vmatpush.msrb.mxu3 %v1924_v29 }
  0x87   : > { %515 = vmatpush.msrb.mxu2 %v1934_v32  ;;  %538 = vmatpush.msrb.mxu3 %v1936_v33 }
  0x89   : > { %516 = vmatpush.msrb.mxu2 %v1946_v36  ;;  %539 = vmatpush.msrb.mxu3 %v1948_v37 }
  0x8b   : > { %517 = vmatpush.msrb.mxu2 %v1958_v40  ;;  %540 = vmatpush.msrb.mxu3 %v1960_v41  ;;  %v2100_v41 = vld [vmem:[#allocation5] sm:$0xff] }
  0x8d   : > { %518 = vmatpush.msrb.mxu2 %v1970_v44  ;;  %541 = vmatpush.msrb.mxu3 %v1972_v45 }
  0x8f   : > { %519 = vmatpush.msrb.mxu2 %v1982_v48  ;;  %542 = vmatpush.msrb.mxu3 %v1984_v49 }
  0x91   : > { %520 = vmatpush.msrb.mxu2 %v1994_v52  ;;  %543 = vmatpush.msrb.mxu3 %v1996_v53  ;;  %v2096_v53 = vld [vmem:[%s257_s21 + $0x18] sm:$0xff] }
  0x92   : > { %2656 = vst [vmem:[#allocation52_spill] sm:$0xff] %v2096_v53 }
  0x93   : > { %521 = vmatpush.msrb.mxu2 %v2006_v56  ;;  %544 = vmatpush.msrb.mxu3 %v2008_v57 }
  0x95   : > { %522 = vmatpush.msrb.mxu2 %v2018_v60  ;;  %545 = vmatpush.msrb.mxu3 %v2020_v61 }
  0x96   : > { %523 = vmatmul.f32.vlgmr.msrb.gmra.mxu2 %v2086_v59  ;;  %546 = vmatmul.f32.vlgmr.msrb.gmra.mxu3 %v2088_v63 }
  0x9e   : > { %526 = vmatmul.f32.gmra.mxu2 %v2094_v55  ;;  %549 = vmatmul.f32.gmra.mxu3 %v2096_v53 }
  0xf1   : > { %v379_v57 = vpop.f32.mrf.mxu0  ;;  %v402_v49 = vpop.f32.mrf.mxu1 }
  0xf2   : > { %v403_v61 = vadd.f32 %v402_v49, %v379_v57  ;;  %v2659_v57 = vld [vmem:[#allocation42_spill] sm:$0xff] }
  0xf8   : > { %v425_v56 = vpop.f32.mrf.mxu2  ;;  %v448_v51 = vpop.f32.mrf.mxu3 }
  0xf9   : > { %v449_v33 = vadd.f32 %v448_v51, %v425_v56  ;;  %v2658_v51 = vld [vmem:[#allocation38_spill] sm:$0xff] }
  0xfa   : > { %v382_v45 = vpop.f32.mrf.mxu0  ;;  %v405_v60 = vpop.f32.mrf.mxu1 }
  0xfb   : > { %v406_v52 = vadd.f32 %v405_v60, %v382_v45  ;;  %v2108_v45 = vld [vmem:[#allocation5 + $0x8] sm:$0xff]  ;;  %v2660_v60 = vld [vmem:[#allocation46_spill] sm:$0xff] }
  0xfd   : > { %475 = vmatpush.msrb.mxu0 %v406_v52 }
  0xff   : > { %476 = vmatpush.msrb.mxu0 %v403_v61  ;;  %v2661_v61 = vld [vmem:[#allocation21_spill] sm:$0xff] }
 0x100   : > { %1334 = vmatmul.msk.f32.vlgmr.msrb.gmra.mxu0 %vm454_vm0, %v2100_v41 }
 0x101   : > { %553 = vmatpush.msra.mxu0 %v1846_v2  ;;  %v428_v48 = vpop.f32.mrf.mxu2  ;;  %v451_v37 = vpop.f32.mrf.mxu3 }
 0x102   : > { %v452_v44 = vadd.f32 %v451_v37, %v428_v48 }
 0x103   : > { %554 = vmatpush.msra.mxu0 %v1858_v6 }
 0x104   : > { %498 = vmatpush.msrb.mxu1 %v452_v44  ;;  %v2657_v44 = vld [vmem:[#allocation34_spill] sm:$0xff] }
 0x105   : > { %555 = vmatpush.msra.mxu0 %v1868_v10 }
 0x106   : > { %499 = vmatpush.msrb.mxu1 %v449_v33 }
 0x107   : > { %556 = vmatpush.msra.mxu0 %v1880_v14  ;;  %1336 = vmatmul.msk.f32.vlgmr.msrb.gmra.mxu1 %vm454_vm0, %v2100_v41 }
 0x108   : > { %576 = vmatpush.msra.mxu1 %v1850_v3  ;;  %1335 = vmatmul.msk.f32.gmra.mxu0 %vm454_vm0, %v2108_v45 }
 0x109   : > { %557 = vmatpush.msra.mxu0 %v1892_v18 }
 0x10a   : > { %577 = vmatpush.msra.mxu1 %v1860_v7 }
 0x10b   : > { %558 = vmatpush.msra.mxu0 %v1904_v22 }
 0x10c   : > { %578 = vmatpush.msra.mxu1 %v1870_v11 }
 0x10d   : > { %559 = vmatpush.msra.mxu0 %v1916_v26 }
 0x10e   : > { %579 = vmatpush.msra.mxu1 %v1882_v15 }
 0x10f   : > { %560 = vmatpush.msra.mxu0 %v1928_v30  ;;  %1337 = vmatmul.msk.f32.gmra.mxu1 %vm454_vm0, %v2108_v45 }
 0x110   : > { %580 = vmatpush.msra.mxu1 %v1894_v19 }
 0x111   : > { %561 = vmatpush.msra.mxu0 %v1940_v34 }
 0x112   : > { %581 = vmatpush.msra.mxu1 %v1906_v23 }
 0x113   : > { %562 = vmatpush.msra.mxu0 %v1952_v38 }
 0x114   : > { %582 = vmatpush.msra.mxu1 %v1918_v27 }
 0x115   : > { %563 = vmatpush.msra.mxu0 %v1964_v42 }
 0x116   : > { %583 = vmatpush.msra.mxu1 %v1930_v31 }
 0x117   : > { %564 = vmatpush.msra.mxu0 %v1976_v46 }
 0x118   : > { %584 = vmatpush.msra.mxu1 %v1942_v35 }
 0x119   : > { %565 = vmatpush.msra.mxu0 %v1988_v50  ;;  %v524_v33 = vpop.f32.mrf.mxu2  ;;  %v547_v37 = vpop.f32.mrf.mxu3 }
 0x11a   : > { %585 = vmatpush.msra.mxu1 %v1954_v39  ;;  %v548_v52 = vadd.f32 %v547_v37, %v524_v33  ;;  %v2662_v33 = vld [vmem:[#allocation29_spill] sm:$0xff]  ;;  %v2663_v37 = vld [vmem:[#allocation24_spill] sm:$0xff] }
 0x11b   : > { %566 = vmatpush.msra.mxu0 %v2000_v54 }
 0x11c   : > { %586 = vmatpush.msra.mxu1 %v1966_v43 }
 0x11d   : > { %567 = vmatpush.msra.mxu0 %v2012_v58 }
 0x11e   : > { %587 = vmatpush.msra.mxu1 %v1978_v47 }
 0x11f   : > { %568 = vmatpush.msra.mxu0 %v2024_v62 }
 0x120   : > { %588 = vmatpush.msra.mxu1 %v2657_v44  ;;  %569 = vmatmul.f32.vlgmr.msra.gmra.mxu0 %v2086_v59 }
 0x121   : > { %649 = vmatpush.msrb.mxu0 %v1842_v0  ;;  %v527_v48 = vpop.f32.mrf.mxu2  ;;  %v550_v49 = vpop.f32.mrf.mxu3 }
 0x122   : > { %589 = vmatpush.msra.mxu1 %v2658_v51  ;;  %v551_v56 = vadd.f32 %v550_v49, %v527_v48  ;;  %v2664_v48 = vld [vmem:[#allocation31_spill] sm:$0xff] }
 0x123   : > { %650 = vmatpush.msrb.mxu0 %v1852_v4  ;;  %v2665_v49 = vld [vmem:[#allocation27_spill] sm:$0xff] }
 0x124   : > { %590 = vmatpush.msra.mxu1 %v2659_v57  ;;  %613 = vmatpush.msra.mxu2 %v551_v56  ;;  %v2667_v56 = vld [vmem:[#allocation30_spill] sm:$0xff] }
 0x125   : > { %651 = vmatpush.msrb.mxu0 %v1862_v8 }
 0x126   : > { %591 = vmatpush.msra.mxu1 %v2660_v60  ;;  %614 = vmatpush.msra.mxu2 %v548_v52  ;;  %v2666_v52 = vld [vmem:[#allocation35_spill] sm:$0xff] }
 0x127   : > { %592 = vmatmul.f32.vlgmr.msra.gmra.mxu1 %v2088_v63  ;;  %1338 = vmatmul.msk.f32.vlgmr.msra.gmra.mxu2 %vm454_vm0, %v2100_v41 }
 0x128   : > { %672 = vmatpush.msrb.mxu1 %v1844_v1  ;;  %652 = vmatpush.msrb.mxu0 %v1874_v12 }
 0x129   : > { %695 = vmatpush.msrb.mxu2 %v1846_v2  ;;  %572 = vmatmul.f32.gmra.mxu0 %v2094_v55 }
 0x12a   : > { %673 = vmatpush.msrb.mxu1 %v1854_v5  ;;  %653 = vmatpush.msrb.mxu0 %v1886_v16 }
 0x12b   : > { %696 = vmatpush.msrb.mxu2 %v1858_v6 }
 0x12c   : > { %674 = vmatpush.msrb.mxu1 %v1866_v9  ;;  %654 = vmatpush.msrb.mxu0 %v1898_v20 }
 0x12d   : > { %697 = vmatpush.msrb.mxu2 %v1868_v10 }
 0x12e   : > { %675 = vmatpush.msrb.mxu1 %v1876_v13  ;;  %655 = vmatpush.msrb.mxu0 %v1910_v24 }
 0x12f   : > { %595 = vmatmul.f32.gmra.mxu1 %v2096_v53  ;;  %1339 = vmatmul.msk.f32.gmra.mxu2 %vm454_vm0, %v2108_v45  ;;  %v2668_v53 = vld [vmem:[#allocation47_spill] sm:$0xff] }
 0x130   : > { %676 = vmatpush.msrb.mxu1 %v1888_v17  ;;  %656 = vmatpush.msrb.mxu0 %v1922_v28  ;;  %v645_v63 = vmul.f32 %v2668_v53, %v2668_v53  ;;  %v2674_v53 = vld [vmem:[#allocation40_spill] sm:$0xff] }
 0x131   : > { %698 = vmatpush.msrb.mxu2 %v1880_v14 }
 0x132   : > { %677 = vmatpush.msrb.mxu1 %v1900_v21  ;;  %657 = vmatpush.msrb.mxu0 %v1934_v32 }
 0x133   : > { %699 = vmatpush.msrb.mxu2 %v1892_v18 }
 0x134   : > { %678 = vmatpush.msrb.mxu1 %v1912_v25  ;;  %658 = vmatpush.msrb.mxu0 %v1946_v36 }
 0x135   : > { %700 = vmatpush.msrb.mxu2 %v1904_v22 }
 0x136   : > { %679 = vmatpush.msrb.mxu1 %v1924_v29  ;;  %659 = vmatpush.msrb.mxu0 %v1958_v40 }
 0x137   : > { %701 = vmatpush.msrb.mxu2 %v1916_v26 }
 0x138   : > { %680 = vmatpush.msrb.mxu1 %v2661_v61  ;;  %660 = vmatpush.msrb.mxu0 %v2662_v33  ;;  %v2669_v61 = vld [vmem:[#allocation39_spill] sm:$0xff] }
 0x139   : > { %702 = vmatpush.msrb.mxu2 %v1928_v30  ;;  %v2671_v30 = vld [vmem:[#allocation43_spill] sm:$0xff] }
 0x13a   : > { %681 = vmatpush.msrb.mxu1 %v2663_v37  ;;  %661 = vmatpush.msrb.mxu0 %v2664_v48  ;;  %v2670_v37 = vld [vmem:[#allocation32_spill] sm:$0xff] }
 0x13b   : > { %703 = vmatpush.msrb.mxu2 %v1940_v34  ;;  %v2673_v34 = vld [vmem:[#allocation48_spill] sm:$0xff] }
 0x13c   : > { %682 = vmatpush.msrb.mxu1 %v2665_v49  ;;  %662 = vmatpush.msrb.mxu0 %v2666_v52  ;;  %v2672_v49 = vld [vmem:[#allocation36_spill] sm:$0xff] }
 0x13d   : > { %704 = vmatpush.msrb.mxu2 %v1952_v38  ;;  %v2198_v38 = vmul.f32 %v2673_v34, %v2673_v34  ;;  %v2677_v34 = vld [vmem:[#allocation50_spill] sm:$0xff] }
 0x13e   : > { %683 = vmatpush.msrb.mxu1 %v2667_v56  ;;  %663 = vmatpush.msrb.mxu0 %v2669_v61 }
 0x13f   : > { %705 = vmatpush.msrb.mxu2 %v1964_v42  ;;  %v2675_v42 = vld [vmem:[#allocation44_spill] sm:$0xff] }
 0x140   : > { %684 = vmatpush.msrb.mxu1 %v2670_v37  ;;  %664 = vmatpush.msrb.mxu0 %v2671_v30  ;;  %v2676_v37 = vld [vmem:[#allocation49_spill] sm:$0xff] }
 0x141   : > { %706 = vmatpush.msrb.mxu2 %v1976_v46  ;;  %665 = vmatmul.f32.vlgmr.msrb.gmra.mxu0 %v645_v63  ;;  %v647_v56 = vmul.f32 %v2676_v37, %v2676_v37 }
 0x142   : > { %685 = vmatpush.msrb.mxu1 %v2672_v49 }
 0x143   : > { %707 = vmatpush.msrb.mxu2 %v1988_v50  ;;  %v2211_v50 = vmul.f32 %v2677_v34, %v2677_v34 }
 0x144   : > { %686 = vmatpush.msrb.mxu1 %v2674_v53 }
 0x145   : > { %708 = vmatpush.msrb.mxu2 %v2000_v54 }
 0x146   : > { %687 = vmatpush.msrb.mxu1 %v2675_v42 }
 0x147   : > { %688 = vmatmul.f32.vlgmr.msrb.gmra.mxu1 %v2198_v38  ;;  %709 = vmatpush.msrb.mxu2 %v2012_v58 }
 0x149   : > { %710 = vmatpush.msrb.mxu2 %v2024_v62  ;;  %668 = vmatmul.f32.gmra.mxu0 %v647_v56 }
 0x14a   : > { %711 = vmatmul.f32.vlgmr.msrb.gmra.mxu2 %v645_v63 }
 0x14b   : > { %791 = vmatpush.msra.mxu2 %v1842_v0 }
 0x14d   : > { %792 = vmatpush.msra.mxu2 %v1852_v4 }
 0x14f   : > { %691 = vmatmul.f32.gmra.mxu1 %v2211_v50  ;;  %793 = vmatpush.msra.mxu2 %v1862_v8 }
 0x151   : > { %794 = vmatpush.msra.mxu2 %v1874_v12 }
 0x152   : > { %714 = vmatmul.f32.gmra.mxu2 %v647_v56 }
 0x153   : > { %795 = vmatpush.msra.mxu2 %v1886_v16 }
 0x155   : > { %796 = vmatpush.msra.mxu2 %v1898_v20 }
 0x157   : > { %797 = vmatpush.msra.mxu2 %v1910_v24 }
 0x159   : > { %798 = vmatpush.msra.mxu2 %v1922_v28 }
 0x15b   : > { %799 = vmatpush.msra.mxu2 %v1934_v32 }
 0x15d   : > { %800 = vmatpush.msra.mxu2 %v1946_v36 }
 0x15f   : > { %801 = vmatpush.msra.mxu2 %v1958_v40 }
 0x161   : > { %802 = vmatpush.msra.mxu2 %v2662_v33 }
 0x163   : > { %803 = vmatpush.msra.mxu2 %v2664_v48 }
 0x165   : > { %804 = vmatpush.msra.mxu2 %v2666_v52 }
 0x167   : > { %805 = vmatpush.msra.mxu2 %v2669_v61 }
 0x169   : > { %806 = vmatpush.msra.mxu2 %v2671_v30 }
 0x17d   : > { %v478_v63 = vpop.f32.mrf.mxu0 }
 0x17e   : > { %v2236_v33 = vmul.f32 %v478_v63, %v478_v63 }
 0x184   : > { %v2230_v56 = vpop.f32.mrf.mxu1 }
 0x185   : > { %2678 = vst [vmem:[#allocation34_spill] sm:$0xff] %v2230_v56  ;;  %v2232_v34 = vpop.f32.mrf.mxu0 }
 0x186   : > { %2679 = vst [vmem:[#allocation38_spill] sm:$0xff] %v2232_v34 }
 0x18c   : > { %v2234_v37 = vpop.f32.mrf.mxu1 }
 0x18d   : > { %2680 = vst [vmem:[#allocation42_spill] sm:$0xff] %v2234_v37  ;;  %v2693_v37 = vld [vmem:[#allocation51_spill] sm:$0xff] }
 0x18e   : > { %v2304_v34 = vmul.f32 %v2693_v37, %v2693_v37 }
 0x19d   : > { %v570_v36 = vpop.f32.mrf.mxu0 }
 0x1a4   : > { %v593_v32 = vpop.f32.mrf.mxu1 }
 0x1a5   : > { %v594_v56 = vadd.f32 %v593_v32, %v570_v36 }
 0x1a6   : > { %v573_v40 = vpop.f32.mrf.mxu0 }
 0x1aa   : > { %v616_v28 = vpop.f32.mrf.mxu2 }
 0x1ab   : > { %v2238_v48 = vmul.f32 %v616_v28, %v616_v28  ;;  %v2240_v52 = vmul.f32 %v616_v28, %v478_v63  ;;  %v787_v63 = vmul.f32 %v2086_v59, %v2086_v59 }
 0x1ac   : > { %v596_v61 = vpop.f32.mrf.mxu1 }
 0x1ad   : > { %2681 = vst [vmem:[#allocation46_spill] sm:$0xff] %v2238_v48  ;;  %v597_v24 = vadd.f32 %v596_v61, %v573_v40  ;;  %v2244_v30 = vadd.f32 %v2238_v48, %v2236_v33  ;;  %807 = vmatmul.f32.vlgmr.msra.gmra.mxu2 %v787_v63  ;;  %v2695_v48 = vld [vmem:[#allocation52_spill] sm:$0xff] }
 0x1ae   : > { %2682 = vst [vmem:[#allocation40_spill] sm:$0xff] %v2240_v52  ;;  %v2692_v52 = vld [vmem:[#allocation32_spill] sm:$0xff] }
 0x1af   : > { %2683 = vst [vmem:[#allocation53_spill] sm:$0xff] %v2244_v30  ;;  %636 = vmatpush.msra.mxu3 %v597_v24  ;;  %v2694_v30 = vld [vmem:[#allocation33_spill] sm:$0xff] }
 0x1b1   : > { %637 = vmatpush.msra.mxu3 %v594_v56  ;;  %v789_v56 = vmul.f32 %v2094_v55, %v2094_v55 }
 0x1b2   : > { %1340 = vmatmul.msk.f32.vlgmr.msra.gmra.mxu3 %vm454_vm0, %v2100_v41 }
 0x1b3   : > { %718 = vmatpush.msrb.mxu3 %v1850_v3 }
 0x1b5   : > { %719 = vmatpush.msrb.mxu3 %v1860_v7  ;;  %810 = vmatmul.f32.gmra.mxu2 %v789_v56 }
 0x1b7   : > { %720 = vmatpush.msrb.mxu3 %v1870_v11 }
 0x1b9   : > { %721 = vmatpush.msrb.mxu3 %v1882_v15 }
 0x1ba   : > { %1341 = vmatmul.msk.f32.gmra.mxu3 %vm454_vm0, %v2108_v45 }
 0x1bb   : > { %722 = vmatpush.msrb.mxu3 %v1894_v19 }
 0x1bd   : > { %723 = vmatpush.msrb.mxu3 %v1906_v23 }
 0x1be   : > { %v666_v24 = vpop.f32.mrf.mxu0 }
 0x1bf   : > { %724 = vmatpush.msrb.mxu3 %v1918_v27 }
 0x1c1   : > { %725 = vmatpush.msrb.mxu3 %v1930_v31 }
 0x1c3   : > { %726 = vmatpush.msrb.mxu3 %v1942_v35 }
 0x1c4   : > { %v689_v28 = vpop.f32.mrf.mxu1 }
 0x1c5   : > { %727 = vmatpush.msrb.mxu3 %v1954_v39  ;;  %v690_v40 = vadd.f32 %v689_v28, %v666_v24  ;;  %v2686_v24 = vld [vmem:[#allocation24_spill] sm:$0xff]  ;;  %v2687_v28 = vld [vmem:[#allocation22_spill] sm:$0xff] }
 0x1c6   : > { %v669_v32 = vpop.f32.mrf.mxu0 }
 0x1c7   : > { %728 = vmatpush.msrb.mxu3 %v1966_v43 }
 0x1c9   : > { %729 = vmatpush.msrb.mxu3 %v1978_v47 }
 0x1cb   : > { %730 = vmatpush.msrb.mxu3 %v2657_v44 }
 0x1cc   : > { %v692_v36 = vpop.f32.mrf.mxu1 }
 0x1cd   : > { %v693_v61 = vadd.f32 %v692_v36, %v669_v32  ;;  %731 = vmatpush.msrb.mxu3 %v2658_v51  ;;  %v2688_v32 = vld [vmem:[#allocation27_spill] sm:$0xff]  ;;  %v2689_v36 = vld [vmem:[#allocation25_spill] sm:$0xff] }
 0x1cf   : > { %732 = vmatpush.msrb.mxu3 %v2659_v57  ;;  %755 = vmatpush.msra.mxu0 %v693_v61  ;;  %v2691_v61 = vld [vmem:[#allocation28_spill] sm:$0xff] }
 0x1d1   : > { %733 = vmatpush.msrb.mxu3 %v2660_v60  ;;  %756 = vmatpush.msra.mxu0 %v690_v40  ;;  %v2690_v40 = vld [vmem:[#allocation30_spill] sm:$0xff] }
 0x1d2   : > { %734 = vmatmul.f32.vlgmr.msrb.gmra.mxu3 %v2198_v38  ;;  %1342 = vmatmul.msk.f32.vlgmr.msra.gmra.mxu0 %vm454_vm0, %v2100_v41  ;;  %v2684_v38 = vld [vmem:[#allocation21_spill] sm:$0xff] }
 0x1d3   : > { %814 = vmatpush.msra.mxu3 %v1844_v1  ;;  %837 = vmatpush.msrb.mxu0 %v1846_v2 }
 0x1d5   : > { %815 = vmatpush.msra.mxu3 %v1854_v5  ;;  %838 = vmatpush.msrb.mxu0 %v1858_v6 }
 0x1d7   : > { %816 = vmatpush.msra.mxu3 %v1866_v9  ;;  %839 = vmatpush.msrb.mxu0 %v1868_v10 }
 0x1d9   : > { %817 = vmatpush.msra.mxu3 %v1876_v13  ;;  %840 = vmatpush.msrb.mxu0 %v1880_v14 }
 0x1da   : > { %737 = vmatmul.f32.gmra.mxu3 %v2211_v50  ;;  %1343 = vmatmul.msk.f32.gmra.mxu0 %vm454_vm0, %v2108_v45  ;;  %v2685_v50 = vld [vmem:[#allocation19_spill] sm:$0xff] }
 0x1db   : > { %818 = vmatpush.msra.mxu3 %v1888_v17  ;;  %841 = vmatpush.msrb.mxu0 %v1892_v18 }
 0x1dd   : > { %819 = vmatpush.msra.mxu3 %v1900_v21  ;;  %842 = vmatpush.msrb.mxu0 %v1904_v22 }
 0x1df   : > { %820 = vmatpush.msra.mxu3 %v1912_v25  ;;  %843 = vmatpush.msrb.mxu0 %v1916_v26 }
 0x1e1   : > { %821 = vmatpush.msra.mxu3 %v1924_v29  ;;  %844 = vmatpush.msrb.mxu0 %v2685_v50 }
 0x1e3   : > { %822 = vmatpush.msra.mxu3 %v2684_v38  ;;  %845 = vmatpush.msrb.mxu0 %v2687_v28 }
 0x1e5   : > { %823 = vmatpush.msra.mxu3 %v2686_v24  ;;  %846 = vmatpush.msrb.mxu0 %v2689_v36 }
 0x1e7   : > { %824 = vmatpush.msra.mxu3 %v2688_v32  ;;  %847 = vmatpush.msrb.mxu0 %v2691_v61 }
 0x1e9   : > { %825 = vmatpush.msra.mxu3 %v2690_v40  ;;  %848 = vmatpush.msrb.mxu0 %v1976_v46 }
 0x1eb   : > { %826 = vmatpush.msra.mxu3 %v2692_v52  ;;  %849 = vmatpush.msrb.mxu0 %v2694_v30 }
 0x1ed   : > { %827 = vmatpush.msra.mxu3 %v2672_v49  ;;  %850 = vmatpush.msrb.mxu0 %v2000_v54  ;;  %v2315_v49 = vmul.f32 %v2695_v48, %v2695_v48  ;;  %v2698_v48 = vld [vmem:[#allocation20_spill] sm:$0xff] }
 0x1ef   : > { %828 = vmatpush.msra.mxu3 %v2674_v53  ;;  %851 = vmatpush.msrb.mxu0 %v2012_v58  ;;  %v2701_v58 = vld [vmem:[#allocation29_spill] sm:$0xff] }
 0x1f1   : > { %829 = vmatpush.msra.mxu3 %v2675_v42  ;;  %852 = vmatpush.msrb.mxu0 %v2024_v62  ;;  %v2697_v62 = vld [vmem:[#allocation18_spill] sm:$0xff] }
 0x1f2   : > { %830 = vmatmul.f32.vlgmr.msra.gmra.mxu3 %v2304_v34  ;;  %853 = vmatmul.f32.vlgmr.msrb.gmra.mxu0 %v787_v63  ;;  %v2696_v63 = vld [vmem:[#allocation17_spill] sm:$0xff] }
 0x1f3   : > { %933 = vmatpush.msra.mxu0 %v1842_v0  ;;  %v2699_v0 = vld [vmem:[#allocation23_spill] sm:$0xff] }
 0x1f5   : > { %934 = vmatpush.msra.mxu0 %v1852_v4  ;;  %v2700_v4 = vld [vmem:[#allocation26_spill] sm:$0xff] }
 0x1f7   : > { %935 = vmatpush.msra.mxu0 %v1862_v8  ;;  %v2702_v8 = vld [vmem:[#allocation31_spill] sm:$0xff] }
 0x1f9   : > { %936 = vmatpush.msra.mxu0 %v1874_v12  ;;  %v2703_v12 = vld [vmem:[#allocation35_spill] sm:$0xff] }
 0x1fa   : > { %833 = vmatmul.f32.gmra.mxu3 %v2315_v49  ;;  %856 = vmatmul.f32.gmra.mxu0 %v789_v56  ;;  %v2704_v56 = vld [vmem:[#allocation39_spill] sm:$0xff] }
 0x1fb   : > { %937 = vmatpush.msra.mxu0 %v1886_v16  ;;  %v2705_v16 = vld [vmem:[#allocation43_spill] sm:$0xff] }
 0x1fd   : > { %938 = vmatpush.msra.mxu0 %v1898_v20 }
 0x1ff   : > { %939 = vmatpush.msra.mxu0 %v2696_v63  ;;  %v2336_v63 = vpop.f32.mrf.mxu2 }
 0x201   : > { %940 = vmatpush.msra.mxu0 %v2697_v62 }
 0x203   : > { %941 = vmatpush.msra.mxu0 %v2698_v48 }
 0x205   : > { %942 = vmatpush.msra.mxu0 %v2699_v0 }
 0x207   : > { %943 = vmatpush.msra.mxu0 %v2700_v4 }
 0x209   : > { %944 = vmatpush.msra.mxu0 %v2701_v58  ;;  %v712_v58 = vpop.f32.mrf.mxu2 }
 0x20b   : > { %945 = vmatpush.msra.mxu0 %v2702_v8 }
 0x20d   : > { %946 = vmatpush.msra.mxu0 %v2703_v12 }
 0x20f   : > { %947 = vmatpush.msra.mxu0 %v2704_v56 }
 0x211   : > { %948 = vmatpush.msra.mxu0 %v2705_v16  ;;  %v715_v8 = vpop.f32.mrf.mxu2  ;;  %v2706_v16 = vld [vmem:[#allocation47_spill] sm:$0xff] }
 0x235   : > { %v2334_v20 = vpop.f32.mrf.mxu3 }
 0x23d   : > { %v2338_v62 = vpop.f32.mrf.mxu3 }
 0x24f   : > { %v2340_v48 = vpop.f32.mrf.mxu0 }
 0x250   : > { %v1083_v0 = vsub.f32 %v2340_v48, %v2236_v33 }
 0x255   : > { %v735_v4 = vpop.f32.mrf.mxu3 }
 0x256   : > { %v736_v54 = vadd.f32 %v735_v4, %v712_v58  ;;  %v929_v58 = vmul.f32 %v2086_v59, %v2706_v16  ;;  %v2707_v59 = vld [vmem:[#allocation49_spill] sm:$0xff]  ;;  %v1078_v16 = vmul.f32 %v2338_v62, %v2338_v62 }
 0x257   : > { %v931_v4 = vmul.f32 %v2094_v55, %v2707_v59  ;;  %v2720_v59 = vld [vmem:[#allocation42_spill] sm:$0xff] }
 0x258   : > { %949 = vmatmul.f32.vlgmr.msra.gmra.mxu0 %v929_v58 }
 0x25d   : > { %v738_v42 = vpop.f32.mrf.mxu3 }
 0x25e   : > { %v739_v12 = vadd.f32 %v738_v42, %v715_v8  ;;  %v808_v42 = vpop.f32.mrf.mxu2 }
 0x260   : > { %778 = vmatpush.msra.mxu1 %v739_v12  ;;  %952 = vmatmul.f32.gmra.mxu0 %v931_v4 }
 0x262   : > { %779 = vmatpush.msra.mxu1 %v736_v54 }
 0x263   : > { %1344 = vmatmul.msk.f32.vlgmr.msra.gmra.mxu1 %vm454_vm0, %v2100_v41 }
 0x264   : > { %860 = vmatpush.msrb.mxu1 %v1850_v3 }
 0x266   : > { %861 = vmatpush.msrb.mxu1 %v1860_v7  ;;  %v811_v7 = vpop.f32.mrf.mxu2 }
 0x268   : > { %862 = vmatpush.msrb.mxu1 %v1870_v11 }
 0x26a   : > { %863 = vmatpush.msrb.mxu1 %v1882_v15 }
 0x26b   : > { %1345 = vmatmul.msk.f32.gmra.mxu1 %vm454_vm0, %v2108_v45 }
 0x26c   : > { %864 = vmatpush.msrb.mxu1 %v1894_v19 }
 0x26e   : > { %865 = vmatpush.msrb.mxu1 %v1906_v23 }
 0x270   : > { %866 = vmatpush.msrb.mxu1 %v1918_v27 }
 0x272   : > { %867 = vmatpush.msrb.mxu1 %v1930_v31 }
 0x274   : > { %868 = vmatpush.msrb.mxu1 %v1942_v35 }
 0x275   : > { %v831_v3 = vpop.f32.mrf.mxu3 }
 0x276   : > { %869 = vmatpush.msrb.mxu1 %v1954_v39  ;;  %v832_v54 = vadd.f32 %v831_v3, %v808_v42 }
 0x278   : > { %870 = vmatpush.msrb.mxu1 %v1966_v43 }
 0x27a   : > { %871 = vmatpush.msrb.mxu1 %v1978_v47 }
 0x27c   : > { %872 = vmatpush.msrb.mxu1 %v2657_v44 }
 0x27d   : > { %v834_v11 = vpop.f32.mrf.mxu3 }
 0x27e   : > { %v835_v56 = vadd.f32 %v834_v11, %v811_v7  ;;  %873 = vmatpush.msrb.mxu1 %v2658_v51 }
 0x280   : > { %874 = vmatpush.msrb.mxu1 %v2659_v57  ;;  %897 = vmatpush.msrb.mxu2 %v835_v56 }
 0x282   : > { %875 = vmatpush.msrb.mxu1 %v2660_v60  ;;  %898 = vmatpush.msrb.mxu2 %v832_v54 }
 0x283   : > { %876 = vmatmul.f32.vlgmr.msrb.gmra.mxu1 %v2304_v34  ;;  %1346 = vmatmul.msk.f32.vlgmr.msrb.gmra.mxu2 %vm454_vm0, %v2100_v41 }
 0x284   : > { %956 = vmatpush.msra.mxu1 %v1844_v1  ;;  %979 = vmatpush.msra.mxu2 %v1846_v2  ;;  %v2708_v1 = vld [vmem:[#allocation36_spill] sm:$0xff] }
 0x285   : > { %v2709_v2 = vld [vmem:[#allocation48_spill] sm:$0xff] }
 0x286   : > { %957 = vmatpush.msra.mxu1 %v1854_v5  ;;  %980 = vmatpush.msra.mxu2 %v1858_v6  ;;  %v930_v5 = vmul.f32 %v2693_v37, %v2709_v2  ;;  %v2710_v6 = vld [vmem:[#allocation37_spill] sm:$0xff] }
 0x288   : > { %958 = vmatpush.msra.mxu1 %v1866_v9  ;;  %981 = vmatpush.msra.mxu2 %v1868_v10  ;;  %v2711_v9 = vld [vmem:[#allocation44_spill] sm:$0xff]  ;;  %v2712_v10 = vld [vmem:[#allocation41_spill] sm:$0xff] }
 0x28a   : > { %959 = vmatpush.msra.mxu1 %v1876_v13  ;;  %982 = vmatpush.msra.mxu2 %v1880_v14  ;;  %v2713_v13 = vld [vmem:[#allocation45_spill] sm:$0xff]  ;;  %v2714_v14 = vld [vmem:[#allocation50_spill] sm:$0xff] }
 0x28b   : > { %879 = vmatmul.f32.gmra.mxu1 %v2315_v49  ;;  %1347 = vmatmul.msk.f32.gmra.mxu2 %vm454_vm0, %v2108_v45 }
 0x28c   : > { %960 = vmatpush.msra.mxu1 %v1888_v17  ;;  %983 = vmatpush.msra.mxu2 %v1892_v18  ;;  %v2715_v17 = vld [vmem:[#allocation52_spill] sm:$0xff] }
 0x28d   : > { %v932_v18 = vmul.f32 %v2715_v17, %v2714_v14 }
 0x28e   : > { %961 = vmatpush.msra.mxu1 %v1900_v21  ;;  %984 = vmatpush.msra.mxu2 %v1904_v22  ;;  %v761_v22 = vpop.f32.mrf.mxu0 }
 0x290   : > { %962 = vmatpush.msra.mxu1 %v1912_v25  ;;  %985 = vmatpush.msra.mxu2 %v1916_v26 }
 0x292   : > { %963 = vmatpush.msra.mxu1 %v1924_v29  ;;  %986 = vmatpush.msra.mxu2 %v2685_v50 }
 0x294   : > { %964 = vmatpush.msra.mxu1 %v2684_v38  ;;  %987 = vmatpush.msra.mxu2 %v2687_v28 }
 0x296   : > { %965 = vmatpush.msra.mxu1 %v2686_v24  ;;  %988 = vmatpush.msra.mxu2 %v2689_v36  ;;  %v854_v26 = vpop.f32.mrf.mxu0  ;;  %v1449_v36 = vld [vmem:[#allocation2 + $0x1e8] sm:$0xff] }
 0x298   : > { %966 = vmatpush.msra.mxu1 %v2688_v32  ;;  %989 = vmatpush.msra.mxu2 %v2691_v61  ;;  %v1448_v32 = vld [vmem:[#allocation2 + $0x1f8] sm:$0xff] }
 0x29a   : > { %967 = vmatpush.msra.mxu1 %v2690_v40  ;;  %990 = vmatpush.msra.mxu2 %v1976_v46  ;;  %v2716_v46 = vld [vmem:[#allocation46_spill] sm:$0xff] }
 0x29b   : > { %v1450_v40 = vld [vmem:[#allocation2 + $0x1d8] sm:$0xff] }
 0x29c   : > { %968 = vmatpush.msra.mxu1 %v2692_v52  ;;  %991 = vmatpush.msra.mxu2 %v2694_v30  ;;  %v2717_v52 = vld [vmem:[#allocation53_spill] sm:$0xff] }
 0x29d   : > { %v1119_v38 = vadd.f32 0.0001, %v2717_v52 }
 0x29e   : > { %969 = vmatpush.msra.mxu1 %v2708_v1  ;;  %992 = vmatpush.msra.mxu2 %v2710_v6  ;;  %v857_v34 = vpop.f32.mrf.mxu0 }
 0x2a0   : > { %970 = vmatpush.msra.mxu1 %v2674_v53  ;;  %993 = vmatpush.msra.mxu2 %v2712_v10 }
 0x2a2   : > { %971 = vmatpush.msra.mxu1 %v2711_v9  ;;  %994 = vmatpush.msra.mxu2 %v2713_v13 }
 0x2a3   : > { %972 = vmatmul.f32.vlgmr.msra.gmra.mxu1 %v930_v5  ;;  %995 = vmatmul.f32.vlgmr.msra.gmra.mxu2 %v929_v58 }
 0x2ab   : > { %975 = vmatmul.f32.gmra.mxu1 %v932_v18  ;;  %998 = vmatmul.f32.gmra.mxu2 %v931_v4  ;;  %v1074_v4 = vmul.f32 %v2720_v59, %v2720_v59 }
 0x2ad   : > { %v1118_v6 = vadd.f32 %v1078_v16, %v1074_v4 }
 0x2af   : > { %v1122_v17 = vadd.f32 0.0001, %v1118_v6  ;;  %v1082_v6 = vmul.f32 %v2338_v62, %v2720_v59 }
 0x2d5   : > { %v950_v33 = vpop.f32.mrf.mxu0 }
 0x2e0   : > { %v2410_v21 = vpop.f32.mrf.mxu1 }
 0x2e8   : > { %v2412_v25 = vpop.f32.mrf.mxu1 }
 0x2e9   : > { %v1086_v9 = vsub.f32 %v2412_v25, %v1074_v4  ;;  %v2721_v25 = vld [vmem:[#allocation40_spill] sm:$0xff] }
 0x2ea   : > { %v1095_v52 = vmul.f32 2.0, %v2721_v25 }
 0x300   : > { %v877_v29 = vpop.f32.mrf.mxu1 }
 0x301   : > { %v878_v50 = vadd.f32 %v877_v29, %v854_v26 }
 0x306   : > { %v900_v30 = vpop.f32.mrf.mxu2 }
 0x307   : > { %v1087_v53 = vsub.f32 %v900_v30, %v2716_v46 }
 0x308   : > { %v880_v55 = vpop.f32.mrf.mxu1 }
 0x309   : > { %v1123_v37 = vadd.f32 %v1087_v53, %v1083_v0  ;;  %v881_v49 = vadd.f32 %v880_v55, %v857_v34 }
 0x30b   : > { %v1127_v24 = vadd.f32 0.0009, %v1123_v37  ;;  %920 = vmatpush.msrb.mxu3 %v881_v49 }
 0x30d   : > { %v2419_v28 = vmul.f32 %v1127_v24, %v1119_v38  ;;  %921 = vmatpush.msrb.mxu3 %v878_v50 }
 0x30e   : > { %1348 = vmatmul.msk.f32.vlgmr.msrb.gmra.mxu3 %vm454_vm0, %v2100_v41 }
 0x30f   : > { %1002 = vmatpush.msra.mxu3 %v1448_v32  ;;  %1440 = vrcp.f32 %v2419_v28 }
 0x311   : > { %1003 = vmatpush.msra.mxu3 %v1449_v36 }
 0x313   : > { %1004 = vmatpush.msra.mxu3 %v1450_v40  ;;  %v1099_v40 = vadd.f32 0.0001, %v1095_v52 }
 0x315   : > { %1005 = vmatpush.msra.mxu3 %v1882_v15  ;;  %v953_v15 = vpop.f32.mrf.mxu0  ;;  %v1441_v13 = vpop.eup %1440 }
 0x316   : > { %1349 = vmatmul.msk.f32.gmra.mxu3 %vm454_vm0, %v2108_v45 }
 0x317   : > { %1006 = vmatpush.msra.mxu3 %v1894_v19 }
 0x319   : > { %1007 = vmatpush.msra.mxu3 %v1906_v23 }
 0x31b   : > { %1008 = vmatpush.msra.mxu3 %v1918_v27  ;;  %v903_v27 = vpop.f32.mrf.mxu2 }
 0x31d   : > { %1009 = vmatpush.msra.mxu3 %v1930_v31  ;;  %v1077_v31 = vmul.f32 %v2336_v63, %v2336_v63 }
 0x31f   : > { %1010 = vmatpush.msra.mxu3 %v1942_v35  ;;  %v2718_v35 = vld [vmem:[#allocation38_spill] sm:$0xff] }
 0x320   : > { %v973_v61 = vpop.f32.mrf.mxu1  ;;  %v1081_v24 = vmul.f32 %v2336_v63, %v2718_v35 }
 0x321   : > { %1011 = vmatpush.msra.mxu3 %v1954_v39  ;;  %v974_v48 = vadd.f32 %v973_v61, %v950_v33  ;;  %v1073_v39 = vmul.f32 %v2718_v35, %v2718_v35 }
 0x323   : > { %1012 = vmatpush.msra.mxu3 %v1966_v43  ;;  %v1089_v43 = vsub.f32 %v903_v27, %v1077_v31  ;;  %v1117_v0 = vadd.f32 %v1077_v31, %v1073_v39 }
 0x325   : > { %1013 = vmatpush.msra.mxu3 %v1978_v47  ;;  %v1076_v47 = vmul.f32 %v2334_v20, %v2334_v20  ;;  %v1121_v54 = vadd.f32 0.0001, %v1117_v0 }
 0x327   : > { %1014 = vmatpush.msra.mxu3 %v2657_v44  ;;  %v1085_v44 = vsub.f32 %v761_v22, %v1073_v39  ;;  %v1139_v22 = vmul.f32 %v1441_v13, %v2419_v28 }
 0x328   : > { %v976_v19 = vpop.f32.mrf.mxu1 }
 0x329   : > { %v977_v23 = vadd.f32 %v976_v19, %v953_v15  ;;  %1015 = vmatpush.msra.mxu3 %v2658_v51  ;;  %v2719_v51 = vld [vmem:[#allocation34_spill] sm:$0xff]  ;;  %v1143_v30 = vsub.f32 2.0, %v1139_v22 }
 0x32b   : > { %1016 = vmatpush.msra.mxu3 %v2659_v57  ;;  %1039 = vmatpush.msrb.mxu0 %v977_v23  ;;  %v1072_v57 = vmul.f32 %v2719_v51, %v2719_v51  ;;  %v1147_v46 = vmul.f32 %v1441_v13, %v1143_v30 }
 0x32c   : > { %1360 = vmatpush.msrb.mxu2 %v977_v23 }
 0x32d   : > { %1017 = vmatpush.msra.mxu3 %v2660_v60  ;;  %1040 = vmatpush.msrb.mxu0 %v974_v48  ;;  %v1125_v60 = vadd.f32 %v1089_v43, %v1085_v44  ;;  %v1116_v12 = vadd.f32 %v1076_v47, %v1072_v57  ;;  %v1084_v42 = vsub.f32 %v2410_v21, %v1072_v57  ;;  %v996_v21 = vpop.f32.mrf.mxu2 }
 0x32e   : > { %1361 = vmatpush.msrb.mxu2 %v974_v48  ;;  %1018 = vmatmul.f32.vlgmr.msra.gmra.mxu3 %v930_v5  ;;  %v1151_v37 = vmul.f32 %v1147_v46, %v2419_v28  ;;  %v1097_v48 = vmul.f32 2.0, %v1081_v24 }
 0x32f   : > { %1350 = vmatmul.msk.f32.vlgmr.msrb.gmra.mxu0 %vm454_vm0, %v2100_v41  ;;  %1351 = vmatmul.msk.f32.vlgmr.msrb.gmra.mxu2 %vm454_vm0, %v2108_v45  ;;  %v1129_v7 = vadd.f32 0.0009, %v1125_v60  ;;  %v1120_v56 = vadd.f32 0.0001, %v1116_v12 }
 0x330   : > { %v1155_v36 = vsub.f32 2.0, %v1151_v37 }
 0x331   : > { %v1133_v1 = vmul.f32 %v1129_v7, %v1121_v54 }
 0x332   : > { %v1159_v27 = vmul.f32 %v1155_v36, %v1147_v46 }
 0x333   : > { %1442 = vrcp.f32 %v1133_v1 }
 0x335   : > { %v999_v53 = vpop.f32.mrf.mxu2 }
 0x336   : > { %1021 = vmatmul.f32.gmra.mxu3 %v932_v18 }
 0x339   : > { %v1443_v29 = vpop.eup %1442 }
 0x33a   : > { %v1141_v34 = vmul.f32 %v1443_v29, %v1133_v1 }
 0x33c   : > { %v1145_v55 = vsub.f32 2.0, %v1141_v34 }
 0x33e   : > { %v1149_v38 = vmul.f32 %v1443_v29, %v1145_v55 }
 0x340   : > { %v1153_v33 = vmul.f32 %v1149_v38, %v1133_v1 }
 0x342   : > { %v1157_v43 = vsub.f32 2.0, %v1153_v33 }
 0x344   : > { %v1161_v60 = vmul.f32 %v1157_v43, %v1149_v38 }
 0x391   : > { %v923_v8 = vpop.f32.mrf.mxu3 }
 0x392   : > { %v1088_v3 = vsub.f32 %v923_v8, %v1076_v47  ;;  %v1101_v47 = vadd.f32 0.0001, %v1097_v48 }
 0x394   : > { %v1124_v11 = vadd.f32 %v1088_v3, %v1084_v42 }
 0x396   : > { %v1128_v58 = vadd.f32 0.0009, %v1124_v11 }
 0x398   : > { %v2456_v2 = vmul.f32 %v1128_v58, %v1120_v56 }
 0x399   : > { %v926_v5 = vpop.f32.mrf.mxu3 }
 0x39a   : > { %v1090_v10 = vsub.f32 %v926_v5, %v1078_v16  ;;  %1444 = vrcp.f32 %v2456_v2  ;;  %v1080_v16 = vmul.f32 %v2334_v20, %v2719_v51 }
 0x39c   : > { %v1126_v14 = vadd.f32 %v1090_v10, %v1086_v9  ;;  %v1096_v1 = vmul.f32 2.0, %v1080_v16 }
 0x39e   : > { %v1130_v18 = vadd.f32 0.0009, %v1126_v14  ;;  %v1100_v13 = vadd.f32 0.0001, %v1096_v1 }
 0x3a0   : > { %v1134_v26 = vmul.f32 %v1130_v18, %v1122_v17  ;;  %v1445_v42 = vpop.eup %1444 }
 0x3a1   : > { %v1140_v3 = vmul.f32 %v1445_v42, %v2456_v2 }
 0x3a2   : > { %1446 = vrcp.f32 %v1134_v26 }
 0x3a3   : > { %v1144_v11 = vsub.f32 2.0, %v1140_v3 }
 0x3a5   : > { %v1148_v56 = vmul.f32 %v1445_v42, %v1144_v11 }
 0x3a7   : > { %v1152_v4 = vmul.f32 %v1148_v56, %v2456_v2 }
 0x3a8   : > { %v1447_v7 = vpop.eup %1446 }
 0x3a9   : > { %v1142_v54 = vmul.f32 %v1447_v7, %v1134_v26  ;;  %v1156_v10 = vsub.f32 2.0, %v1152_v4 }
 0x3ab   : > { %v1146_v58 = vsub.f32 2.0, %v1142_v54  ;;  %v1160_v29 = vmul.f32 %v1156_v10, %v1148_v56 }
 0x3ac   : > { %v1042_v49 = vpop.f32.mrf.mxu0 }
 0x3ad   : > { %v1091_v50 = vsub.f32 %v1042_v49, %v2721_v25  ;;  %v1150_v5 = vmul.f32 %v1447_v7, %v1146_v58 }
 0x3af   : > { %v1103_v32 = vmul.f32 2.0, %v1091_v50  ;;  %v1154_v14 = vmul.f32 %v1150_v5, %v1134_v26 }
 0x3b1   : > { %v1107_v61 = vadd.f32 0.0009, %v1103_v32  ;;  %v1019_v15 = vpop.f32.mrf.mxu3  ;;  %v1158_v30 = vsub.f32 2.0, %v1154_v14 }
 0x3b2   : > { %v1045_v19 = vpop.f32.mrf.mxu2  ;;  %v1020_v8 = vadd.f32 %v1019_v15, %v996_v21  ;;  %v1098_v21 = vmul.f32 2.0, %v1082_v6 }
 0x3b3   : > { %v1111_v23 = vmul.f32 %v1107_v61, %v1099_v40  ;;  %v1093_v28 = vsub.f32 %v1045_v19, %v1081_v24  ;;  %v1162_v62 = vmul.f32 %v1158_v30, %v1150_v5  ;;  %v1187_v40 = vlaneseq }
 0x3b4   : > { %v1102_v34 = vadd.f32 0.0001, %v1098_v21 }
 0x3b5   : > { %v1163_v31 = vmul.f32 %v1159_v27, %v1111_v23  ;;  %v1105_v39 = vmul.f32 2.0, %v1093_v28  ;;  %vm1189_vm2 = vcmp.lt.s32.totalorder %v1187_v40, 256 }
 0x3b7   : > { %v1109_v44 = vadd.f32 0.0009, %v1105_v39 }
 0x3b9   : > { %v1113_v57 = vmul.f32 %v1109_v44, %v1101_v47  ;;  %v1022_v0 = vpop.f32.mrf.mxu3 }
 0x3ba   : > { %v1023_v63 = vadd.f32 %v1022_v0, %v999_v53 }
 0x3bb   : > { %v1165_v35 = vmul.f32 %v1161_v60, %v1113_v57 }
 0x3bc   : > { %1062 = vmatpush.msrb.mxu1 %v1023_v63  ;;  %1362 = vmatpush.msrb.mxu3 %v1023_v63 }
 0x3bd   : > { %v1167_v12 = vadd.f32 %v1165_v35, %v1163_v31 }
 0x3be   : > { %1063 = vmatpush.msrb.mxu1 %v1020_v8  ;;  %1363 = vmatpush.msrb.mxu3 %v1020_v8 }
 0x3bf   : > { %1352 = vmatmul.msk.f32.vlgmr.msrb.gmra.mxu1 %vm454_vm0, %v2100_v41  ;;  %1353 = vmatmul.msk.f32.vlgmr.msrb.gmra.mxu3 %vm454_vm0, %v2108_v45  ;;  %v1168_v46 = vrot.slane %v1167_v12, 4 }
 0x3c1   : > { %v1169_v59 = vadd.f32 %v1168_v46, %v1167_v12 }
 0x3c3   : > { %v1170_v26 = vrot.slane %v1169_v59, 2 }
 0x3c5   : > { %v1171_v38 = vadd.f32 %v1170_v26, %v1169_v59 }
 0x3c7   : > { %v1172_v32 = vrot.slane %v1171_v38, 1 }
 0x3c9   : > { %v1173_v61 = vadd.f32 %v1172_v32, %v1171_v38 }
 0x43c   : > { %v1065_v41 = vpop.f32.mrf.mxu1 }
 0x43d   : > { %v1092_v45 = vsub.f32 %v1065_v41, %v1080_v16 }
 0x43f   : > { %v1104_v9 = vmul.f32 2.0, %v1092_v45 }
 0x441   : > { %v1108_v17 = vadd.f32 0.0009, %v1104_v9 }
 0x442   : > { %v1068_v18 = vpop.f32.mrf.mxu3 }
 0x443   : > { %v1112_v22 = vmul.f32 %v1108_v17, %v1100_v13  ;;  %v1094_v20 = vsub.f32 %v1068_v18, %v1082_v6 }
 0x445   : > { %v1164_v51 = vmul.f32 %v1160_v29, %v1112_v22  ;;  %v1106_v2 = vmul.f32 2.0, %v1094_v20 }
 0x447   : > { %v1110_v53 = vadd.f32 0.0009, %v1106_v2 }
 0x449   : > { %v1114_v55 = vmul.f32 %v1110_v53, %v1102_v34 }
 0x44b   : > { %v1166_v37 = vmul.f32 %v1162_v62, %v1114_v55 }
 0x44d   : > { %v1174_v49 = vadd.f32 %v1166_v37, %v1164_v51 }
 0x44f   : > { %v1175_v25 = vrot.slane %v1174_v49, 4 }
 0x451   : > { %v1176_v52 = vadd.f32 %v1175_v25, %v1174_v49 }
 0x453   : > { %v1177_v50 = vrot.slane %v1176_v52, 2 }
 0x455   : > { %v1178_v24 = vadd.f32 %v1177_v50, %v1176_v52 }
 0x457   : > { %v1179_v36 = vrot.slane %v1178_v24, 1 }
 0x459   : > { %v1180_v33 = vadd.f32 %v1179_v36, %v1178_v24 }
 0x45b   : > { %v1183_v15 = vrot.slane %v1180_v33, 7 }
 0x45d   : > { %v1185_v19 = vsel %vm1184_vm1, %v1173_v61, %v1183_v15 }
 0x45e   : > { %1191 = vst.msk [vmem:[%s287_s11] sm:$0x3] %vm1189_vm2, %v1185_v19 }
 0x45f   : > { %1598 = shalt.err (!%p1595_p13)
}
 0x460   : > { %1376 = dma.vmem_to_hbm [thread:$0]  (%p1753_p5), %s1206_s14, 32, %s1208_s20, %s1193_s19  }
 0x461 PF: > { %p1401_p0 = scmp.ge.s32.totalorder %s1645_s18, 2  ;;  %s1219_s24 = sand.u32 1, %s1633_s15  }
 0x462   : > { %s1220_s25 = scalar_lea.sflag [#allocation4], %s1219_s24 }
 0x463   : > { %p1393_p9 = pnand %p1401_p0, %p1713_p6 }
 0x465   : > { %p1394_p3 = pneg %p1393_p9 }
 0x467   : > { %1628 = dma.done.wait (%p1394_p3), %s1220_s25, 32  }
 0x468   : > { %1630 = vsyncadd (%p1394_p3), %s1220_s25, 4294967264  ;;  %s2722_s18 = sld [smem:[#allocation15_spill]]  ;;  %s2725_s15 = smov %s1637_s16 }
 0x469   : > { %s2723_s1 = sld [smem:[#allocation14_spill]] }
 0x46a   : > { %s2724_s17 = sld [smem:[#allocation16_spill]] }
 0x46e   : > { %p16_p1 = scmp.ge.s32.totalorder %s2722_s18, 6  }
 0x46f   : > { %s2726_s16 = smov %s2723_s1 }
 0x470   :  { %18 = sbr.rel (!%p16_p1) target bundleno = 9 (0x9), region = 99 }
 0x475   :  { %1226 = vsyncpa [#allocation3], 1 }
 0x476   :  { %1228 = vsyncpa [#allocation3 + $0x1], 1 }
 0x477   :  { %1229 = vsyncpa [#allocation6], 1 }
 0x478   :  { %1230 = vsyncpa [#allocation4], 1 }
 0x479   :  { %1232 = vsyncpa [#allocation4 + $0x1], 1 }

</bundles_post_ra>
